<compile_context>
chip_gen: v7x
topology: tpu7x:2x2x1
jax: 0.10.0
libtpu: 0.0.40
codegen_flags: <defaults>
</compile_context>

<pallas_src>
import functools

import jax
import jax.numpy as jnp
from jax import lax
from jax.experimental import pallas as pl
from jax.experimental.pallas import tpu as pltpu

LEAKY_SLOPE = 0.2
BN_EPS = 1e-5
PRED_PAD = 128        # lane-dense width for the fc prediction store


def _leaky(v):
    # max(v, 0.2*v) == LeakyReLU(v) since slope < 1 : one vmul + one vmax on the VPU.
    return jnp.maximum(v, LEAKY_SLOPE * v)


# ---------------------------------------------------------------------------
# Fused kernel: num_layers x (CalWeights + UpdateNode) + final fc; one grid step
# handles a block of TB tasks.
# ---------------------------------------------------------------------------
def _make_fused_kernel(num_layers, TB, N, emb, pred_pad):
    def kernel(x_ref, g_ref, *refs):
        o_ref = refs[-1]
        wrefs = refs[:-1]          # 8 per layer + 3 for the fc

        x = x_ref[...]             # [TB, N, C0]  node features (stay resident)
        g = g_ref[...]             # [TB, N, emb] global embedding

        # Diagonal mask, hoisted once and reused by every layer.
        row = lax.broadcasted_iota(jnp.int32, (TB, N, N), 1)
        col = lax.broadcasted_iota(jnp.int32, (TB, N, N), 2)
        diag = row == col

        idx = 0
        for _ in range(num_layers):
            w1, w2, w3, w4, w5, wlA, wlB, bl = wrefs[idx:idx + 8]
            idx += 8
            C = x.shape[-1]

            # CalWeights: pairwise |xi - xj|, flattened over (task, i, j) so all TB tasks
            # share one [(TB*N*N), C] @ [C, H] matmul chain on the MXU.
            d = jnp.abs(x[:, :, None, :] - x[:, None, :, :])        # [TB, N, N, C]
            h = d.reshape(TB * N * N, C)                            # lane-preserving collapse
            h = _leaky(jnp.dot(h, w1[...], preferred_element_type=jnp.float32))
            h = _leaky(jnp.dot(h, w2[...], preferred_element_type=jnp.float32))
            h = _leaky(jnp.dot(h, w3[...], preferred_element_type=jnp.float32))
            h = _leaky(jnp.dot(h, w4[...], preferred_element_type=jnp.float32))
            H = h.shape[-1]

            # conv_5 (H -> 1) as a weighted lane-reduce (avoids a lane-changing reshape).
            # Its bias + BN shift add the same constant to every logit of a row and cancel
            # exactly under the row softmax, so they are dropped.
            logits = jnp.sum(h.reshape(TB, N, N, H) * w5[...], axis=-1)   # [TB, N, N]

            # softmax activation with the diagonal suppressed (w - 1e8 * I, as in the
            # reference; exact as long as logits stay far below ~1e7 in magnitude).
            logits = jnp.where(diag, logits - 1e8, logits)
            m = jnp.max(logits, axis=-1, keepdims=True)
            e = jnp.exp(logits - m)
            w_soft = e * pl.reciprocal(jnp.sum(e, axis=-1, keepdims=True),
                                       approx=True)                      # [TB, N, N]

            # UpdateNode: cat([w_soft @ x, I @ x], -1) @ W == (w_soft@x)@wlA + x@wlB.
            # Reassociated to  w_soft @ (x @ wlA)  so the batched matmul only carries OUT
            # lanes.  (Linear weight rows ordered [rows for w_soft@x ; rows for x].)
            x_flat = x.reshape(TB * N, C)
            z = jnp.dot(x_flat, wlA[...], preferred_element_type=jnp.float32)   # [TB*N, OUT]
            OUT = z.shape[-1]
            m0 = jnp.einsum('tij,tjo->tio', w_soft, z.reshape(TB, N, OUT),
                            preferred_element_type=jnp.float32)                 # [TB, N, OUT]
            y = (m0.reshape(TB * N, OUT)
                 + jnp.dot(x_flat, wlB[...], preferred_element_type=jnp.float32)
                 + bl[...])                                                     # [TB*N, OUT]

            # x_{l+1} = cat([new_nodes, nodes], -1) -- stays in VMEM, never re-stored.
            x = jnp.concatenate([y.reshape(TB, N, OUT), x], axis=-1)

        # Final fc: pred = x @ W_x + g @ W_g + b.  Weights are zero-padded to 128 output
        # lanes in the wrapper, so this is directly a lane-dense unmasked store.
        fc_wx, fc_wg, fc_b = wrefs[idx], wrefs[idx + 1], wrefs[idx + 2]
        Cf = x.shape[-1]
        pred = (jnp.dot(x.reshape(TB * N, Cf), fc_wx[...],
                        preferred_element_type=jnp.float32)
                + jnp.dot(g.reshape(TB * N, emb), fc_wg[...],
                          preferred_element_type=jnp.float32)
                + fc_b[...])                                              # [TB*N, PRED_PAD]
        o_ref[...] = pred.reshape(TB, N, pred_pad)

    return kernel


def gnn_fused_apply(params, x0, g, cfg, task_block=None):
    """Run all GNN layers + fc in a single pallas_call; returns pred [T, N, n_way]."""
    T, N, C0 = x0.shape
    emb = g.shape[-1]
    n_way = cfg["n_way"]
    L = cfg["num_layers"]

    # Batch all tasks of a block into one grid step (TB*N*N matmul rows).
    TB = T if task_block is None else task_block
    assert T % TB == 0, "t_task must be divisible by the task block"
    # NOTE: N a multiple of 8 keeps every in-kernel reshape layout-only (N = 8 here).

    weight_args = []
    for lp in params["layers"]:
        weight_args += [lp["w1"], lp["w2"], lp["w3"], lp["w4"], lp["w5"],
                        lp["wlA"], lp["wlB"], lp["bl"]]

    # Zero-pad the fc weights/bias to PRED_PAD output lanes: extra lanes produce exact
    # zeros, the store is one unmasked 128-lane slab, and the wrapper slices them off.
    padw = PRED_PAD - n_way
    fc_wx_p = jnp.pad(params["fc_wx"], ((0, 0), (0, padw)))
    fc_wg_p = jnp.pad(params["fc_wg"], ((0, 0), (0, padw)))
    fc_b_p = jnp.pad(params["fc_b"], ((0, 0), (0, padw)))
    weight_args += [fc_wx_p, fc_wg_p, fc_b_p]

    def full(a):
        nd = a.ndim
        return pl.BlockSpec(a.shape, lambda b, nd=nd: (0,) * nd)

    kernel = _make_fused_kernel(L, TB, N, emb, PRED_PAD)
    out_pad = pl.pallas_call(
        kernel,
        out_shape=jax.ShapeDtypeStruct((T, N, PRED_PAD), jnp.float32),
        grid=(T // TB,),
        in_specs=[pl.BlockSpec((TB, N, C0), lambda b: (b, 0, 0)),
                  pl.BlockSpec((TB, N, emb), lambda b: (b, 0, 0))]
                 + [full(a) for a in weight_args],
        out_specs=pl.BlockSpec((TB, N, PRED_PAD), lambda b: (b, 0, 0)),
        compiler_params=pltpu.CompilerParams(
            dimension_semantics=("parallel",)),       # independent tasks -> v7x megacore
    )(x0, g, *weight_args)
    return out_pad[:, :, :n_way]


# ---------------------------------------------------------------------------
# Deterministic parameter initialization (synthetic; BN folded, eval-mode defaults).
# TODO(synk): training-mode BatchNorm (batch statistics) has no clean in-kernel
# equivalent here; BN is folded as eval-mode with default running stats.
# ---------------------------------------------------------------------------
def init_params(key, cfg):
    s = 1.0 / jnp.sqrt(1.0 + BN_EPS)          # folded default-init eval BatchNorm scale
    in_ch0 = cfg["emb_size"] + cfg["n_way"]
    H = cfg["hidden"]
    H2 = int(cfg["hidden"] * 1.5)
    OUT = cfg["out_channel"]

    def rnd(k, shape, fan_in, scale=None):
        v = jax.random.normal(k, shape, jnp.float32) / jnp.sqrt(float(fan_in))
        return v * (s if scale is None else scale)

    layers = []
    for i in range(cfg["num_layers"]):
        C = in_ch0 + i * OUT
        key, *ks = jax.random.split(key, 9)
        lp = dict(
            w1=rnd(ks[0], (C, H), C),
            w2=rnd(ks[1], (H, H2), H),
            w3=rnd(ks[2], (H2, H2), H2),
            w4=rnd(ks[3], (H2, H), H2),
            w5=rnd(ks[4], (1, H), H),           # conv_5 weight; bias cancels under softmax
            wlA=rnd(ks[5], (C, OUT), 2 * C),    # Linear rows for (w_soft @ x)
            wlB=rnd(ks[6], (C, OUT), 2 * C),    # Linear rows for (I @ x) = x
            bl=rnd(ks[7], (1, OUT), 2 * C),
        )
        layers.append(lp)

    D_x = in_ch0 + cfg["num_layers"] * OUT
    D_fc = D_x + cfg["emb_size"]
    key, k1, k2, k3 = jax.random.split(key, 4)
    fc_wx = jax.random.normal(k1, (D_x, cfg["n_way"]), jnp.float32) / jnp.sqrt(float(D_fc))
    fc_wg = jax.random.normal(k2, (cfg["emb_size"], cfg["n_way"]),
                              jnp.float32) / jnp.sqrt(float(D_fc))
    fc_b = jax.random.normal(k3, (1, cfg["n_way"]), jnp.float32) * 0.01
    return dict(layers=layers, fc_wx=fc_wx, fc_wg=fc_wg, fc_b=fc_b)


# ---------------------------------------------------------------------------
# GNN.forward
# ---------------------------------------------------------------------------
def gnn_forward(params, embedding, global_embedding, support_y, query_y, cfg):
    T = cfg["t_task"]
    n_way, k_shot, k_query = cfg["n_way"], cfg["k_shot"], cfg["k_query"]
    ns, nq = n_way * k_shot, n_way * k_query

    support_x = jnp.concatenate(
        [embedding[:, :ns, :], support_y.reshape(T, ns, n_way)], axis=-1)
    query_x = jnp.concatenate(
        [embedding[:, ns:, :], jnp.zeros((T, nq, n_way), jnp.float32)], axis=-1)
    x0 = jnp.concatenate([support_x, query_x], axis=1)          # [T, N, emb + n_way]

    pred = gnn_fused_apply(params, x0, global_embedding, cfg)   # [T, N, n_way]

    pred_support = pred[:, :ns, :].reshape(-1, n_way)
    pred_query = pred[:, ns:, :].reshape(-1, n_way)

    # TODO(synk): cross-entropy / argmax accuracy are tiny scalar reductions; kept in plain
    # JAX (fused by the surrounding jit).
    logits = jnp.concatenate([pred_support, pred_query], axis=0)
    gts = jnp.argmax(jnp.concatenate([support_y, query_y], axis=0), axis=-1)
    logp = jax.nn.log_softmax(logits, axis=-1)
    loss = -jnp.mean(jnp.take_along_axis(logp, gts[:, None], axis=1))

    query_node = jnp.argmax(pred_query, axis=-1)
    query_gt = jnp.argmax(query_y, axis=-1)
    correct = jnp.sum(query_node == query_gt)
    acc = correct.astype(jnp.float32) / float(T * nq)
    return loss, acc


if __name__ == "__main__":
    cfg = dict(t_task=2, n_way=2, k_shot=1, k_query=3,
               emb_size=30, hidden=32, out_channel=16, num_layers=2)
    T = cfg["t_task"]
    n_way, k_shot, k_query = cfg["n_way"], cfg["k_shot"], cfg["k_query"]
    ns, nq = n_way * k_shot, n_way * k_query
    N = ns + nq
    emb = cfg["emb_size"]

    key = jax.random.PRNGKey(0)
    kp, k1, k2, k3, k4 = jax.random.split(key, 5)
    params = init_params(kp, cfg)

    embedding = jax.random.normal(k1, (T, N, emb), jnp.float32)
    global_embedding = jax.random.normal(k2, (T, N, emb), jnp.float32)
    support_y = jax.nn.one_hot(jax.random.randint(k3, (T * ns,), 0, n_way),
                               n_way, dtype=jnp.float32)
    query_y = jax.nn.one_hot(jax.random.randint(k4, (T * nq,), 0, n_way),
                             n_way, dtype=jnp.float32)

    fwd = jax.jit(functools.partial(gnn_forward, cfg=cfg))
    loss, acc = fwd(params, embedding, global_embedding, support_y, query_y)
    jax.block_until_ready((loss, acc))
    print("KERNEL_OK")
</pallas_src>

<mosaic_0001>
module attributes {stable_mosaic.version = 11 : i64} {
  func.func @kernel(%arg0: i32, %arg1: memref<2x8x32xf32, #tpu.memory_space<vmem>>, %arg2: memref<2x8x30xf32, #tpu.memory_space<vmem>>, %arg3: memref<32x32xf32, #tpu.memory_space<vmem>>, %arg4: memref<32x48xf32, #tpu.memory_space<vmem>>, %arg5: memref<48x48xf32, #tpu.memory_space<vmem>>, %arg6: memref<48x32xf32, #tpu.memory_space<vmem>>, %arg7: memref<1x32xf32, #tpu.memory_space<vmem>>, %arg8: memref<32x16xf32, #tpu.memory_space<vmem>>, %arg9: memref<32x16xf32, #tpu.memory_space<vmem>>, %arg10: memref<1x16xf32, #tpu.memory_space<vmem>>, %arg11: memref<48x32xf32, #tpu.memory_space<vmem>>, %arg12: memref<32x48xf32, #tpu.memory_space<vmem>>, %arg13: memref<48x48xf32, #tpu.memory_space<vmem>>, %arg14: memref<48x32xf32, #tpu.memory_space<vmem>>, %arg15: memref<1x32xf32, #tpu.memory_space<vmem>>, %arg16: memref<48x16xf32, #tpu.memory_space<vmem>>, %arg17: memref<48x16xf32, #tpu.memory_space<vmem>>, %arg18: memref<1x16xf32, #tpu.memory_space<vmem>>, %arg19: memref<64x128xf32, #tpu.memory_space<vmem>>, %arg20: memref<30x128xf32, #tpu.memory_space<vmem>>, %arg21: memref<1x128xf32, #tpu.memory_space<vmem>>, %arg22: memref<2x8x128xf32, #tpu.memory_space<vmem>>) attributes {dimension_semantics = [#tpu.dimension_semantics<parallel>], iteration_bounds = array<i64: 1>, scalar_prefetch = 0 : i64, scratch_operands = 0 : i64, tpu.core_type = #tpu.core_type<tc>, window_params = [{transform_indices = @transform_0, window_bounds = array<i64: 2, 8, 32>}, {transform_indices = @transform_1, window_bounds = array<i64: 2, 8, 30>}, {pipeline_mode = #tpu.pipeline_mode<synchronous>, transform_indices = @transform_2, window_bounds = array<i64: 32, 32>}, {pipeline_mode = #tpu.pipeline_mode<synchronous>, transform_indices = @transform_3, window_bounds = array<i64: 32, 48>}, {pipeline_mode = #tpu.pipeline_mode<synchronous>, transform_indices = @transform_4, window_bounds = array<i64: 48, 48>}, {pipeline_mode = #tpu.pipeline_mode<synchronous>, transform_indices = @transform_5, window_bounds = array<i64: 48, 32>}, {pipeline_mode = #tpu.pipeline_mode<synchronous>, transform_indices = @transform_6, window_bounds = array<i64: 1, 32>}, {pipeline_mode = #tpu.pipeline_mode<synchronous>, transform_indices = @transform_7, window_bounds = array<i64: 32, 16>}, {pipeline_mode = #tpu.pipeline_mode<synchronous>, transform_indices = @transform_8, window_bounds = array<i64: 32, 16>}, {pipeline_mode = #tpu.pipeline_mode<synchronous>, transform_indices = @transform_9, window_bounds = array<i64: 1, 16>}, {pipeline_mode = #tpu.pipeline_mode<synchronous>, transform_indices = @transform_10, window_bounds = array<i64: 48, 32>}, {pipeline_mode = #tpu.pipeline_mode<synchronous>, transform_indices = @transform_11, window_bounds = array<i64: 32, 48>}, {pipeline_mode = #tpu.pipeline_mode<synchronous>, transform_indices = @transform_12, window_bounds = array<i64: 48, 48>}, {pipeline_mode = #tpu.pipeline_mode<synchronous>, transform_indices = @transform_13, window_bounds = array<i64: 48, 32>}, {pipeline_mode = #tpu.pipeline_mode<synchronous>, transform_indices = @transform_14, window_bounds = array<i64: 1, 32>}, {pipeline_mode = #tpu.pipeline_mode<synchronous>, transform_indices = @transform_15, window_bounds = array<i64: 48, 16>}, {pipeline_mode = #tpu.pipeline_mode<synchronous>, transform_indices = @transform_16, window_bounds = array<i64: 48, 16>}, {pipeline_mode = #tpu.pipeline_mode<synchronous>, transform_indices = @transform_17, window_bounds = array<i64: 1, 16>}, {pipeline_mode = #tpu.pipeline_mode<synchronous>, transform_indices = @transform_18, window_bounds = array<i64: 64, 128>}, {pipeline_mode = #tpu.pipeline_mode<synchronous>, transform_indices = @transform_19, window_bounds = array<i64: 30, 128>}, {pipeline_mode = #tpu.pipeline_mode<synchronous>, transform_indices = @transform_20, window_bounds = array<i64: 1, 128>}, {transform_indices = @transform_21, window_bounds = array<i64: 2, 8, 128>}]} {
    %c0 = arith.constant 0 : index
    %c0_0 = arith.constant 0 : index
    %c0_1 = arith.constant 0 : index
    %0 = vector.load %arg1[%c0, %c0_0, %c0_1] : memref<2x8x32xf32, #tpu.memory_space<vmem>>, vector<2x8x32xf32>
    %c0_2 = arith.constant 0 : index
    %c0_3 = arith.constant 0 : index
    %c0_4 = arith.constant 0 : index
    %1 = vector.load %arg2[%c0_2, %c0_3, %c0_4] : memref<2x8x30xf32, #tpu.memory_space<vmem>>, vector<2x8x30xf32>
    %2 = tpu.iota {dimensions = array<i32: 1>} : vector<2x8x8xi32>
    %3 = tpu.iota {dimensions = array<i32: 2>} : vector<2x8x8xi32>
    %4 = arith.cmpi eq, %2, %3 : vector<2x8x8xi32>
    %5 = vector.shape_cast %0 : vector<2x8x32xf32> to vector<2x8x1x32xf32>
    %6 = vector.shape_cast %0 : vector<2x8x32xf32> to vector<2x1x8x32xf32>
    %7 = vector.broadcast %5 : vector<2x8x1x32xf32> to vector<2x8x8x32xf32>
    %8 = vector.broadcast %6 : vector<2x1x8x32xf32> to vector<2x8x8x32xf32>
    %9 = arith.subf %7, %8 : vector<2x8x8x32xf32>
    %10 = math.absf %9 : vector<2x8x8x32xf32>
    %11 = vector.shape_cast %10 : vector<2x8x8x32xf32> to vector<128x32xf32>
    %c0_5 = arith.constant 0 : index
    %c0_6 = arith.constant 0 : index
    %12 = vector.load %arg3[%c0_5, %c0_6] : memref<32x32xf32, #tpu.memory_space<vmem>>, vector<32x32xf32>
    %cst = arith.constant dense<0.000000e+00> : vector<128x32xf32>
    %13 = tpu.matmul %11, %12, %cst {dimension_numbers = #tpu.dot_dimension_numbers<[1], [0], [0], [1], [0, 0, 1, 1], [], []>} : vector<128x32xf32>, vector<32x32xf32>, vector<128x32xf32> -> vector<128x32xf32>
    %cst_7 = arith.constant 2.000000e-01 : f32
    %14 = vector.broadcast %cst_7 : f32 to vector<128x32xf32>
    %15 = arith.mulf %14, %13 : vector<128x32xf32>
    %16 = arith.maximumf %13, %15 : vector<128x32xf32>
    %c0_8 = arith.constant 0 : index
    %c0_9 = arith.constant 0 : index
    %17 = vector.load %arg4[%c0_8, %c0_9] : memref<32x48xf32, #tpu.memory_space<vmem>>, vector<32x48xf32>
    %cst_10 = arith.constant dense<0.000000e+00> : vector<128x48xf32>
    %18 = tpu.matmul %16, %17, %cst_10 {dimension_numbers = #tpu.dot_dimension_numbers<[1], [0], [0], [1], [0, 0, 1, 1], [], []>} : vector<128x32xf32>, vector<32x48xf32>, vector<128x48xf32> -> vector<128x48xf32>
    %cst_11 = arith.constant 2.000000e-01 : f32
    %19 = vector.broadcast %cst_11 : f32 to vector<128x48xf32>
    %20 = arith.mulf %19, %18 : vector<128x48xf32>
    %21 = arith.maximumf %18, %20 : vector<128x48xf32>
    %c0_12 = arith.constant 0 : index
    %c0_13 = arith.constant 0 : index
    %22 = vector.load %arg5[%c0_12, %c0_13] : memref<48x48xf32, #tpu.memory_space<vmem>>, vector<48x48xf32>
    %cst_14 = arith.constant dense<0.000000e+00> : vector<128x48xf32>
    %23 = tpu.matmul %21, %22, %cst_14 {dimension_numbers = #tpu.dot_dimension_numbers<[1], [0], [0], [1], [0, 0, 1, 1], [], []>} : vector<128x48xf32>, vector<48x48xf32>, vector<128x48xf32> -> vector<128x48xf32>
    %cst_15 = arith.constant 2.000000e-01 : f32
    %24 = vector.broadcast %cst_15 : f32 to vector<128x48xf32>
    %25 = arith.mulf %24, %23 : vector<128x48xf32>
    %26 = arith.maximumf %23, %25 : vector<128x48xf32>
    %c0_16 = arith.constant 0 : index
    %c0_17 = arith.constant 0 : index
    %27 = vector.load %arg6[%c0_16, %c0_17] : memref<48x32xf32, #tpu.memory_space<vmem>>, vector<48x32xf32>
    %cst_18 = arith.constant dense<0.000000e+00> : vector<128x32xf32>
    %28 = tpu.matmul %26, %27, %cst_18 {dimension_numbers = #tpu.dot_dimension_numbers<[1], [0], [0], [1], [0, 0, 1, 1], [], []>} : vector<128x48xf32>, vector<48x32xf32>, vector<128x32xf32> -> vector<128x32xf32>
    %cst_19 = arith.constant 2.000000e-01 : f32
    %29 = vector.broadcast %cst_19 : f32 to vector<128x32xf32>
    %30 = arith.mulf %29, %28 : vector<128x32xf32>
    %31 = arith.maximumf %28, %30 : vector<128x32xf32>
    %32 = vector.shape_cast %31 : vector<128x32xf32> to vector<2x8x8x32xf32>
    %c0_20 = arith.constant 0 : index
    %c0_21 = arith.constant 0 : index
    %33 = vector.load %arg7[%c0_20, %c0_21] : memref<1x32xf32, #tpu.memory_space<vmem>>, vector<1x32xf32>
    %34 = vector.shape_cast %33 : vector<1x32xf32> to vector<1x1x1x32xf32>
    %35 = vector.broadcast %34 : vector<1x1x1x32xf32> to vector<2x8x8x32xf32>
    %36 = arith.mulf %32, %35 : vector<2x8x8x32xf32>
    %cst_22 = arith.constant dense<0.000000e+00> : vector<2x8x8xf32>
    %37 = vector.multi_reduction <add>, %36, %cst_22 [3] : vector<2x8x8x32xf32> to vector<2x8x8xf32>
    %cst_23 = arith.constant 1.000000e+08 : f32
    %38 = vector.broadcast %cst_23 : f32 to vector<2x8x8xf32>
    %39 = arith.subf %37, %38 : vector<2x8x8xf32>
    %40 = arith.select %4, %39, %37 : vector<2x8x8xi1>, vector<2x8x8xf32>
    %cst_24 = arith.constant dense<0xFF800000> : vector<2x8xf32>
    %41 = vector.multi_reduction <maximumf>, %40, %cst_24 [2] : vector<2x8x8xf32> to vector<2x8xf32>
    %42 = vector.shape_cast %41 : vector<2x8xf32> to vector<2x8x1xf32>
    %43 = vector.broadcast %42 : vector<2x8x1xf32> to vector<2x8x8xf32>
    %44 = arith.subf %40, %43 : vector<2x8x8xf32>
    %45 = math.exp %44 : vector<2x8x8xf32>
    %cst_25 = arith.constant dense<0.000000e+00> : vector<2x8xf32>
    %46 = vector.multi_reduction <add>, %45, %cst_25 [2] : vector<2x8x8xf32> to vector<2x8xf32>
    %47 = vector.shape_cast %46 : vector<2x8xf32> to vector<2x8x1xf32>
    %48 = tpu.reciprocal %47 {approx = true} : vector<2x8x1xf32> -> vector<2x8x1xf32>
    %49 = vector.broadcast %48 : vector<2x8x1xf32> to vector<2x8x8xf32>
    %50 = arith.mulf %45, %49 : vector<2x8x8xf32>
    %51 = vector.shape_cast %0 : vector<2x8x32xf32> to vector<16x32xf32>
    %c0_26 = arith.constant 0 : index
    %c0_27 = arith.constant 0 : index
    %52 = vector.load %arg8[%c0_26, %c0_27] : memref<32x16xf32, #tpu.memory_space<vmem>>, vector<32x16xf32>
    %cst_28 = arith.constant dense<0.000000e+00> : vector<16x16xf32>
    %53 = tpu.matmul %51, %52, %cst_28 {dimension_numbers = #tpu.dot_dimension_numbers<[1], [0], [0], [1], [0, 0, 1, 1], [], []>} : vector<16x32xf32>, vector<32x16xf32>, vector<16x16xf32> -> vector<16x16xf32>
    %54 = vector.shape_cast %53 : vector<16x16xf32> to vector<2x8x16xf32>
    "tpu.trace_start"() <{level = 10 : i32, message = "tij,tjo->tio"}> : () -> ()
    %cst_29 = arith.constant dense<0.000000e+00> : vector<2x8x16xf32>
    %55 = tpu.matmul %50, %54, %cst_29 {dimension_numbers = #tpu.dot_dimension_numbers<[2], [1], [1], [2], [0, 0, 0, 1, 1, 2], [0], [0]>} : vector<2x8x8xf32>, vector<2x8x16xf32>, vector<2x8x16xf32> -> vector<2x8x16xf32>
    "tpu.trace_stop"() : () -> ()
    %56 = vector.shape_cast %55 : vector<2x8x16xf32> to vector<16x16xf32>
    %c0_30 = arith.constant 0 : index
    %c0_31 = arith.constant 0 : index
    %57 = vector.load %arg9[%c0_30, %c0_31] : memref<32x16xf32, #tpu.memory_space<vmem>>, vector<32x16xf32>
    %cst_32 = arith.constant dense<0.000000e+00> : vector<16x16xf32>
    %58 = tpu.matmul %51, %57, %cst_32 {dimension_numbers = #tpu.dot_dimension_numbers<[1], [0], [0], [1], [0, 0, 1, 1], [], []>} : vector<16x32xf32>, vector<32x16xf32>, vector<16x16xf32> -> vector<16x16xf32>
    %59 = arith.addf %56, %58 : vector<16x16xf32>
    %c0_33 = arith.constant 0 : index
    %c0_34 = arith.constant 0 : index
    %60 = vector.load %arg10[%c0_33, %c0_34] : memref<1x16xf32, #tpu.memory_space<vmem>>, vector<1x16xf32>
    %61 = vector.broadcast %60 : vector<1x16xf32> to vector<16x16xf32>
    %62 = arith.addf %59, %61 : vector<16x16xf32>
    %63 = vector.shape_cast %62 : vector<16x16xf32> to vector<2x8x16xf32>
    %64 = tpu.concatenate %63, %0 in 2 : vector<2x8x16xf32>, vector<2x8x32xf32> -> vector<2x8x48xf32>
    %65 = vector.shape_cast %64 : vector<2x8x48xf32> to vector<2x8x1x48xf32>
    %66 = vector.shape_cast %64 : vector<2x8x48xf32> to vector<2x1x8x48xf32>
    %67 = vector.broadcast %65 : vector<2x8x1x48xf32> to vector<2x8x8x48xf32>
    %68 = vector.broadcast %66 : vector<2x1x8x48xf32> to vector<2x8x8x48xf32>
    %69 = arith.subf %67, %68 : vector<2x8x8x48xf32>
    %70 = math.absf %69 : vector<2x8x8x48xf32>
    %71 = vector.shape_cast %70 : vector<2x8x8x48xf32> to vector<128x48xf32>
    %c0_35 = arith.constant 0 : index
    %c0_36 = arith.constant 0 : index
    %72 = vector.load %arg11[%c0_35, %c0_36] : memref<48x32xf32, #tpu.memory_space<vmem>>, vector<48x32xf32>
    %cst_37 = arith.constant dense<0.000000e+00> : vector<128x32xf32>
    %73 = tpu.matmul %71, %72, %cst_37 {dimension_numbers = #tpu.dot_dimension_numbers<[1], [0], [0], [1], [0, 0, 1, 1], [], []>} : vector<128x48xf32>, vector<48x32xf32>, vector<128x32xf32> -> vector<128x32xf32>
    %cst_38 = arith.constant 2.000000e-01 : f32
    %74 = vector.broadcast %cst_38 : f32 to vector<128x32xf32>
    %75 = arith.mulf %74, %73 : vector<128x32xf32>
    %76 = arith.maximumf %73, %75 : vector<128x32xf32>
    %c0_39 = arith.constant 0 : index
    %c0_40 = arith.constant 0 : index
    %77 = vector.load %arg12[%c0_39, %c0_40] : memref<32x48xf32, #tpu.memory_space<vmem>>, vector<32x48xf32>
    %cst_41 = arith.constant dense<0.000000e+00> : vector<128x48xf32>
    %78 = tpu.matmul %76, %77, %cst_41 {dimension_numbers = #tpu.dot_dimension_numbers<[1], [0], [0], [1], [0, 0, 1, 1], [], []>} : vector<128x32xf32>, vector<32x48xf32>, vector<128x48xf32> -> vector<128x48xf32>
    %cst_42 = arith.constant 2.000000e-01 : f32
    %79 = vector.broadcast %cst_42 : f32 to vector<128x48xf32>
    %80 = arith.mulf %79, %78 : vector<128x48xf32>
    %81 = arith.maximumf %78, %80 : vector<128x48xf32>
    %c0_43 = arith.constant 0 : index
    %c0_44 = arith.constant 0 : index
    %82 = vector.load %arg13[%c0_43, %c0_44] : memref<48x48xf32, #tpu.memory_space<vmem>>, vector<48x48xf32>
    %cst_45 = arith.constant dense<0.000000e+00> : vector<128x48xf32>
    %83 = tpu.matmul %81, %82, %cst_45 {dimension_numbers = #tpu.dot_dimension_numbers<[1], [0], [0], [1], [0, 0, 1, 1], [], []>} : vector<128x48xf32>, vector<48x48xf32>, vector<128x48xf32> -> vector<128x48xf32>
    %cst_46 = arith.constant 2.000000e-01 : f32
    %84 = vector.broadcast %cst_46 : f32 to vector<128x48xf32>
    %85 = arith.mulf %84, %83 : vector<128x48xf32>
    %86 = arith.maximumf %83, %85 : vector<128x48xf32>
    %c0_47 = arith.constant 0 : index
    %c0_48 = arith.constant 0 : index
    %87 = vector.load %arg14[%c0_47, %c0_48] : memref<48x32xf32, #tpu.memory_space<vmem>>, vector<48x32xf32>
    %cst_49 = arith.constant dense<0.000000e+00> : vector<128x32xf32>
    %88 = tpu.matmul %86, %87, %cst_49 {dimension_numbers = #tpu.dot_dimension_numbers<[1], [0], [0], [1], [0, 0, 1, 1], [], []>} : vector<128x48xf32>, vector<48x32xf32>, vector<128x32xf32> -> vector<128x32xf32>
    %cst_50 = arith.constant 2.000000e-01 : f32
    %89 = vector.broadcast %cst_50 : f32 to vector<128x32xf32>
    %90 = arith.mulf %89, %88 : vector<128x32xf32>
    %91 = arith.maximumf %88, %90 : vector<128x32xf32>
    %92 = vector.shape_cast %91 : vector<128x32xf32> to vector<2x8x8x32xf32>
    %c0_51 = arith.constant 0 : index
    %c0_52 = arith.constant 0 : index
    %93 = vector.load %arg15[%c0_51, %c0_52] : memref<1x32xf32, #tpu.memory_space<vmem>>, vector<1x32xf32>
    %94 = vector.shape_cast %93 : vector<1x32xf32> to vector<1x1x1x32xf32>
    %95 = vector.broadcast %94 : vector<1x1x1x32xf32> to vector<2x8x8x32xf32>
    %96 = arith.mulf %92, %95 : vector<2x8x8x32xf32>
    %cst_53 = arith.constant dense<0.000000e+00> : vector<2x8x8xf32>
    %97 = vector.multi_reduction <add>, %96, %cst_53 [3] : vector<2x8x8x32xf32> to vector<2x8x8xf32>
    %cst_54 = arith.constant 1.000000e+08 : f32
    %98 = vector.broadcast %cst_54 : f32 to vector<2x8x8xf32>
    %99 = arith.subf %97, %98 : vector<2x8x8xf32>
    %100 = arith.select %4, %99, %97 : vector<2x8x8xi1>, vector<2x8x8xf32>
    %cst_55 = arith.constant dense<0xFF800000> : vector<2x8xf32>
    %101 = vector.multi_reduction <maximumf>, %100, %cst_55 [2] : vector<2x8x8xf32> to vector<2x8xf32>
    %102 = vector.shape_cast %101 : vector<2x8xf32> to vector<2x8x1xf32>
    %103 = vector.broadcast %102 : vector<2x8x1xf32> to vector<2x8x8xf32>
    %104 = arith.subf %100, %103 : vector<2x8x8xf32>
    %105 = math.exp %104 : vector<2x8x8xf32>
    %cst_56 = arith.constant dense<0.000000e+00> : vector<2x8xf32>
    %106 = vector.multi_reduction <add>, %105, %cst_56 [2] : vector<2x8x8xf32> to vector<2x8xf32>
    %107 = vector.shape_cast %106 : vector<2x8xf32> to vector<2x8x1xf32>
    %108 = tpu.reciprocal %107 {approx = true} : vector<2x8x1xf32> -> vector<2x8x1xf32>
    %109 = vector.broadcast %108 : vector<2x8x1xf32> to vector<2x8x8xf32>
    %110 = arith.mulf %105, %109 : vector<2x8x8xf32>
    %111 = vector.shape_cast %64 : vector<2x8x48xf32> to vector<16x48xf32>
    %c0_57 = arith.constant 0 : index
    %c0_58 = arith.constant 0 : index
    %112 = vector.load %arg16[%c0_57, %c0_58] : memref<48x16xf32, #tpu.memory_space<vmem>>, vector<48x16xf32>
    %cst_59 = arith.constant dense<0.000000e+00> : vector<16x16xf32>
    %113 = tpu.matmul %111, %112, %cst_59 {dimension_numbers = #tpu.dot_dimension_numbers<[1], [0], [0], [1], [0, 0, 1, 1], [], []>} : vector<16x48xf32>, vector<48x16xf32>, vector<16x16xf32> -> vector<16x16xf32>
    %114 = vector.shape_cast %113 : vector<16x16xf32> to vector<2x8x16xf32>
    "tpu.trace_start"() <{level = 10 : i32, message = "tij,tjo->tio"}> : () -> ()
    %cst_60 = arith.constant dense<0.000000e+00> : vector<2x8x16xf32>
    %115 = tpu.matmul %110, %114, %cst_60 {dimension_numbers = #tpu.dot_dimension_numbers<[2], [1], [1], [2], [0, 0, 0, 1, 1, 2], [0], [0]>} : vector<2x8x8xf32>, vector<2x8x16xf32>, vector<2x8x16xf32> -> vector<2x8x16xf32>
    "tpu.trace_stop"() : () -> ()
    %116 = vector.shape_cast %115 : vector<2x8x16xf32> to vector<16x16xf32>
    %c0_61 = arith.constant 0 : index
    %c0_62 = arith.constant 0 : index
    %117 = vector.load %arg17[%c0_61, %c0_62] : memref<48x16xf32, #tpu.memory_space<vmem>>, vector<48x16xf32>
    %cst_63 = arith.constant dense<0.000000e+00> : vector<16x16xf32>
    %118 = tpu.matmul %111, %117, %cst_63 {dimension_numbers = #tpu.dot_dimension_numbers<[1], [0], [0], [1], [0, 0, 1, 1], [], []>} : vector<16x48xf32>, vector<48x16xf32>, vector<16x16xf32> -> vector<16x16xf32>
    %119 = arith.addf %116, %118 : vector<16x16xf32>
    %c0_64 = arith.constant 0 : index
    %c0_65 = arith.constant 0 : index
    %120 = vector.load %arg18[%c0_64, %c0_65] : memref<1x16xf32, #tpu.memory_space<vmem>>, vector<1x16xf32>
    %121 = vector.broadcast %120 : vector<1x16xf32> to vector<16x16xf32>
    %122 = arith.addf %119, %121 : vector<16x16xf32>
    %123 = vector.shape_cast %122 : vector<16x16xf32> to vector<2x8x16xf32>
    %124 = tpu.concatenate %123, %64 in 2 : vector<2x8x16xf32>, vector<2x8x48xf32> -> vector<2x8x64xf32>
    %125 = vector.shape_cast %124 : vector<2x8x64xf32> to vector<16x64xf32>
    %c0_66 = arith.constant 0 : index
    %c0_67 = arith.constant 0 : index
    %126 = vector.load %arg19[%c0_66, %c0_67] : memref<64x128xf32, #tpu.memory_space<vmem>>, vector<64x128xf32>
    %cst_68 = arith.constant dense<0.000000e+00> : vector<16x128xf32>
    %127 = tpu.matmul %125, %126, %cst_68 {dimension_numbers = #tpu.dot_dimension_numbers<[1], [0], [0], [1], [0, 0, 1, 1], [], []>} : vector<16x64xf32>, vector<64x128xf32>, vector<16x128xf32> -> vector<16x128xf32>
    %128 = vector.shape_cast %1 : vector<2x8x30xf32> to vector<16x30xf32>
    %c0_69 = arith.constant 0 : index
    %c0_70 = arith.constant 0 : index
    %129 = vector.load %arg20[%c0_69, %c0_70] : memref<30x128xf32, #tpu.memory_space<vmem>>, vector<30x128xf32>
    %cst_71 = arith.constant dense<0.000000e+00> : vector<16x128xf32>
    %130 = tpu.matmul %128, %129, %cst_71 {dimension_numbers = #tpu.dot_dimension_numbers<[1], [0], [0], [1], [0, 0, 1, 1], [], []>} : vector<16x30xf32>, vector<30x128xf32>, vector<16x128xf32> -> vector<16x128xf32>
    %131 = arith.addf %127, %130 : vector<16x128xf32>
    %c0_72 = arith.constant 0 : index
    %c0_73 = arith.constant 0 : index
    %132 = vector.load %arg21[%c0_72, %c0_73] : memref<1x128xf32, #tpu.memory_space<vmem>>, vector<1x128xf32>
    %133 = vector.broadcast %132 : vector<1x128xf32> to vector<16x128xf32>
    %134 = arith.addf %131, %133 : vector<16x128xf32>
    %135 = vector.shape_cast %134 : vector<16x128xf32> to vector<2x8x128xf32>
    %c0_74 = arith.constant 0 : index
    %c0_75 = arith.constant 0 : index
    %c0_76 = arith.constant 0 : index
    %136 = vector.load %arg22[%c0_74, %c0_75, %c0_76] : memref<2x8x128xf32, #tpu.memory_space<vmem>>, vector<2x8x128xf32>
    tpu.vector_store %arg22[%c0_74, %c0_75, %c0_76], %135 {strides = array<i32>} : memref<2x8x128xf32, #tpu.memory_space<vmem>>, vector<2x8x128xf32>,
    return
  }
  func.func @transform_0(%arg0: i32) -> (i32, i32, i32) {
    %c0_i32 = arith.constant 0 : i32
    %c0_i32_0 = arith.constant 0 : i32
    %c0_i32_1 = arith.constant 0 : i32
    return %arg0, %c0_i32, %c0_i32_0 : i32, i32, i32
  }
  func.func @transform_1(%arg0: i32) -> (i32, i32, i32) {
    %c0_i32 = arith.constant 0 : i32
    %c0_i32_0 = arith.constant 0 : i32
    %c0_i32_1 = arith.constant 0 : i32
    return %arg0, %c0_i32, %c0_i32_0 : i32, i32, i32
  }
  func.func @transform_2(%arg0: i32) -> (i32, i32) {
    %c0_i32 = arith.constant 0 : i32
    %c0_i32_0 = arith.constant 0 : i32
    %c0_i32_1 = arith.constant 0 : i32
    return %c0_i32, %c0_i32_0 : i32, i32
  }
  func.func @transform_3(%arg0: i32) -> (i32, i32) {
    %c0_i32 = arith.constant 0 : i32
    %c0_i32_0 = arith.constant 0 : i32
    %c0_i32_1 = arith.constant 0 : i32
    return %c0_i32, %c0_i32_0 : i32, i32
  }
  func.func @transform_4(%arg0: i32) -> (i32, i32) {
    %c0_i32 = arith.constant 0 : i32
    %c0_i32_0 = arith.constant 0 : i32
    %c0_i32_1 = arith.constant 0 : i32
    return %c0_i32, %c0_i32_0 : i32, i32
  }
  func.func @transform_5(%arg0: i32) -> (i32, i32) {
    %c0_i32 = arith.constant 0 : i32
    %c0_i32_0 = arith.constant 0 : i32
    %c0_i32_1 = arith.constant 0 : i32
    return %c0_i32, %c0_i32_0 : i32, i32
  }
  func.func @transform_6(%arg0: i32) -> (i32, i32) {
    %c0_i32 = arith.constant 0 : i32
    %c0_i32_0 = arith.constant 0 : i32
    %c0_i32_1 = arith.constant 0 : i32
    return %c0_i32, %c0_i32_0 : i32, i32
  }
  func.func @transform_7(%arg0: i32) -> (i32, i32) {
    %c0_i32 = arith.constant 0 : i32
    %c0_i32_0 = arith.constant 0 : i32
    %c0_i32_1 = arith.constant 0 : i32
    return %c0_i32, %c0_i32_0 : i32, i32
  }
  func.func @transform_8(%arg0: i32) -> (i32, i32) {
    %c0_i32 = arith.constant 0 : i32
    %c0_i32_0 = arith.constant 0 : i32
    %c0_i32_1 = arith.constant 0 : i32
    return %c0_i32, %c0_i32_0 : i32, i32
  }
  func.func @transform_9(%arg0: i32) -> (i32, i32) {
    %c0_i32 = arith.constant 0 : i32
    %c0_i32_0 = arith.constant 0 : i32
    %c0_i32_1 = arith.constant 0 : i32
    return %c0_i32, %c0_i32_0 : i32, i32
  }
  func.func @transform_10(%arg0: i32) -> (i32, i32) {
    %c0_i32 = arith.constant 0 : i32
    %c0_i32_0 = arith.constant 0 : i32
    %c0_i32_1 = arith.constant 0 : i32
    return %c0_i32, %c0_i32_0 : i32, i32
  }
  func.func @transform_11(%arg0: i32) -> (i32, i32) {
    %c0_i32 = arith.constant 0 : i32
    %c0_i32_0 = arith.constant 0 : i32
    %c0_i32_1 = arith.constant 0 : i32
    return %c0_i32, %c0_i32_0 : i32, i32
  }
  func.func @transform_12(%arg0: i32) -> (i32, i32) {
    %c0_i32 = arith.constant 0 : i32
    %c0_i32_0 = arith.constant 0 : i32
    %c0_i32_1 = arith.constant 0 : i32
    return %c0_i32, %c0_i32_0 : i32, i32
  }
  func.func @transform_13(%arg0: i32) -> (i32, i32) {
    %c0_i32 = arith.constant 0 : i32
    %c0_i32_0 = arith.constant 0 : i32
    %c0_i32_1 = arith.constant 0 : i32
    return %c0_i32, %c0_i32_0 : i32, i32
  }
  func.func @transform_14(%arg0: i32) -> (i32, i32) {
    %c0_i32 = arith.constant 0 : i32
    %c0_i32_0 = arith.constant 0 : i32
    %c0_i32_1 = arith.constant 0 : i32
    return %c0_i32, %c0_i32_0 : i32, i32
  }
  func.func @transform_15(%arg0: i32) -> (i32, i32) {
    %c0_i32 = arith.constant 0 : i32
    %c0_i32_0 = arith.constant 0 : i32
    %c0_i32_1 = arith.constant 0 : i32
    return %c0_i32, %c0_i32_0 : i32, i32
  }
  func.func @transform_16(%arg0: i32) -> (i32, i32) {
    %c0_i32 = arith.constant 0 : i32
    %c0_i32_0 = arith.constant 0 : i32
    %c0_i32_1 = arith.constant 0 : i32
    return %c0_i32, %c0_i32_0 : i32, i32
  }
  func.func @transform_17(%arg0: i32) -> (i32, i32) {
    %c0_i32 = arith.constant 0 : i32
    %c0_i32_0 = arith.constant 0 : i32
    %c0_i32_1 = arith.constant 0 : i32
    return %c0_i32, %c0_i32_0 : i32, i32
  }
  func.func @transform_18(%arg0: i32) -> (i32, i32) {
    %c0_i32 = arith.constant 0 : i32
    %c0_i32_0 = arith.constant 0 : i32
    %c0_i32_1 = arith.constant 0 : i32
    return %c0_i32, %c0_i32_0 : i32, i32
  }
  func.func @transform_19(%arg0: i32) -> (i32, i32) {
    %c0_i32 = arith.constant 0 : i32
    %c0_i32_0 = arith.constant 0 : i32
    %c0_i32_1 = arith.constant 0 : i32
    return %c0_i32, %c0_i32_0 : i32, i32
  }
  func.func @transform_20(%arg0: i32) -> (i32, i32) {
    %c0_i32 = arith.constant 0 : i32
    %c0_i32_0 = arith.constant 0 : i32
    %c0_i32_1 = arith.constant 0 : i32
    return %c0_i32, %c0_i32_0 : i32, i32
  }
  func.func @transform_21(%arg0: i32) -> (i32, i32, i32) {
    %c0_i32 = arith.constant 0 : i32
    %c0_i32_0 = arith.constant 0 : i32
    %c0_i32_1 = arith.constant 0 : i32
    return %arg0, %c0_i32, %c0_i32_0 : i32, i32, i32
  }
}

</mosaic_0001>

<bundles_post_ra>
// kernel: gnn_forward.1
= control target key start
LH: loop header
LB: loop body
LE: loop exit
PB: predicated region body
PF: predicated region fallthrough
CT: control target
= control target key end

     0   :  { %v72_v0 = vlaneseq  ;;  %v4776_v4 = vmov 1966171168   ;;  %vm293_vm0 = vcmask 261120   ;;  %vm754_vm1 = vcmask 392192   ;;  %s5660_s2 = inlined_call_operand.vmem [shape: f32[32,32], index: 2, kind: input, shape index: {}]   ;;  %s5661_s0 = inlined_call_operand.vmem [shape: f32[2,8,32], index: 0, kind: input, shape index: {}]   ;;  %s5662_s3 = inlined_call_operand.vmem [shape: f32[32,48], index: 3, kind: input, shape index: {}]   ;;  %s5663_s4 = inlined_call_operand.vmem [shape: f32[48,48], index: 4, kind: input, shape index: {}]   ;;  %s5664_s5 = inlined_call_operand.vmem [shape: f32[48,32], index: 5, kind: input, shape index: {}]   ;;  %s5665_s6 = inlined_call_operand.vmem [shape: f32[1,32], index: 6, kind: input, shape index: {}]   ;;  %s5666_s7 = inlined_call_operand.vmem [shape: f32[32,16], index: 7, kind: input, shape index: {}]   ;;  %s5667_s8 = inlined_call_operand.vmem [shape: f32[32,16], index: 8, kind: input, shape index: {}]   ;;  %s5668_s10 = inlined_call_operand.vmem [shape: f32[48,32], index: 10, kind: input, shape index: {}]   ;;  %s5669_s11 = inlined_call_operand.vmem [shape: f32[32,48], index: 11, kind: input, shape index: {}]   ;;  %s5670_s9 = inlined_call_operand.vmem [shape: f32[1,16], index: 9, kind: input, shape index: {}]   ;;  %s5671_s12 = inlined_call_operand.vmem [shape: f32[48,48], index: 12, kind: input, shape index: {}]   ;;  %s5672_s15 = inlined_call_operand.vmem [shape: f32[48,16], index: 15, kind: input, shape index: {}]   ;;  %s5673_s13 = inlined_call_operand.vmem [shape: f32[48,32], index: 13, kind: input, shape index: {}]   ;;  %s5674_s14 = inlined_call_operand.vmem [shape: f32[1,32], index: 14, kind: input, shape index: {}]   ;;  %s5675_s16 = inlined_call_operand.vmem [shape: f32[48,16], index: 16, kind: input, shape index: {}]   ;;  %s5676_s19 = inlined_call_operand.vmem [shape: f32[30,128], index: 19, kind: input, shape index: {}]   ;;  %s5677_s1 = inlined_call_operand.vmem [shape: f32[2,8,30], index: 1, kind: input, shape index: {}]   ;;  %s5678_s18 = inlined_call_operand.vmem [shape: f32[64,128], index: 18, kind: input, shape index: {}]   ;;  %s5679_s17 = inlined_call_operand.vmem [shape: f32[1,16], index: 17, kind: input, shape index: {}]   ;;  %s5680_s20 = inlined_call_operand.vmem [shape: f32[1,128], index: 20, kind: input, shape index: {}]   ;;  %s5681_s21 = inlined_call_operand.vmem [shape: f32[2,8,128], index: 21, kind: output, shape index: {}]  }
   0x1   :  { %5687 = sst [smem:[#allocation2_spill]] %s5660_s2  ;;  %v81_v5 = vunpack.c.l.s4 %v4776_v4  ;;  %vm1378_vm2 = vcmask 1041409   ;;  %vm1380_vm3 = vcmask 1042434   ;;  %vm1382_vm4 = vcmask 1043459  }
   0x2   :  { %5688 = sst [smem:[#allocation3_spill]] %s5661_s0  ;;  %s5693_s26 = sld [smem:[#allocation2_spill]]  ;;  %v4909_v9 = vshrl.u32 %v72_v0, 7  ;;  %vm1384_vm5 = vcmask 1044484   ;;  %vm1386_vm6 = vcmask 1045509   ;;  %vm1388_vm7 = vcmask 1046534  }
   0x3   :  { %5689 = sst [smem:[#allocation4_spill]] %s5662_s3  ;;  %s5694_s22 = sld [smem:[#allocation3_spill]]  ;;  %v82_v11 = vunpack.c.0.s8 %v81_v5  ;;  %vm1390_vm8 = vcmask 1047559   ;;  %vm1499_vm10 = vcmask 64512   ;;  %vm4778_vm11 = vmmov 0  }
   0x4   :  { %5690 = sst [smem:[#allocation5_spill]] %s5663_s4  ;;  %s5695_s24 = sld [smem:[#allocation4_spill]]  ;;  %v4930_v18 = vsub.s32 0, %v4909_v9  ;;  %vm1847_vm12 = vcmask 130048   ;;  %vm3637_vm13 = vcmask 1045504   ;;  %vm3630_vm14 = vcmask 244736  }
   0x5   :  { %5691 = sst [smem:[#allocation6_spill]] %s5664_s5  ;;  %v4925_v16 = vsub.s32 %v82_v11, %v4909_v9  ;;  %vm4780_vm15 = vmmov 1  }
   0x6   :  { %5692 = sst [smem:[#allocation7_spill]] %s5665_s6  ;;  %s5696_s6 = sld [smem:[#allocation5_spill]] }
   0x7   :  { %s5697_s30 = sld [smem:[#allocation6_spill]]  ;;  %s5698_s5 = sld [smem:[#allocation7_spill]] }
   0x8   :  { %v289_v1 = vld [vmem:[%s5693_s26] sm:$0xff]  ;;  %v290_v2 = vld [vmem:[%s5693_s26 + $0x8] sm:$0xff]  ;;  %v291_v3 = vld [vmem:[%s5693_s26 + $0x10] sm:$0xff] }
   0x9   :  { %v4595_v6 = vpack.c.bf16 %v290_v2, %v289_v1  ;;  %v292_v7 = vld [vmem:[%s5693_s26 + $0x18] sm:$0xff]  ;;  %v4906_v8 = vld [vmem:[%s5694_s22] sm:$0xff]  ;;  %v4922_v15 = vld [vmem:[%s5694_s22 + $0x8] sm:$0xff] }
   0xa   :  { %v4599_v10 = vpack.c.bf16 %v292_v7, %v291_v3  ;;  %v79_v12 = vcombine.high %v4906_v8, %v4906_v8  ;;  %v519_v13 = vld [vmem:[%s5695_s24] sm:$0xff]  ;;  %v520_v14 = vld [vmem:[%s5695_s24 + $0x8] sm:$0xff]  ;;  %v86_v17 = vrot.slane %v4906_v8, %v4925_v16  ;;  %v135_v21 = vrot.slane %v4922_v15, %v4925_v16 }
   0xb   :  { %4596 = vmatprep.subr.bf16.mxu0 %v4595_v6  ;;  %4745 = vmatprep.subr.bf16.mxu1 %v4595_v6  ;;  %v4933_v20 = vpack.c.bf16 %v520_v14, %v519_v13  ;;  %v128_v22 = vcombine.high %v4922_v15, %v4922_v15 }
   0xc   :  { %4598 = vmatpush3.bf16.msra.mxu0 %v4595_v6  ;;  %4747 = vmatpush3.bf16.msra.mxu1 %v4595_v6  ;;  %v93_v19 = vrot.slane %v79_v12, %v4925_v16  ;;  %v94_v23 = vcombine.high %v86_v17, %v86_v17  ;;  %v102_v24 = vrot.slane %v86_v17, %v4925_v16 }
   0xd   :  { %4600 = vmatprep.subr.bf16.mxu0 %v4599_v10  ;;  %4746 = vmatprep.subr.bf16.mxu1 %v4599_v10  ;;  %v151_v33 = vrot.slane %v135_v21, %v4925_v16  ;;  %v142_v34 = vrot.slane %v128_v22, %v4925_v16  ;;  %v143_v42 = vcombine.high %v135_v21, %v135_v21 }
   0xe   :  { %v109_v25 = vrot.slane %v93_v19, %v4925_v16  ;;  %v95_v26 = vcombine.high %v93_v19, %v93_v19  ;;  %v124_v27 = vcombine.high %v102_v24, %v102_v24  ;;  %v180_v28 = vrot.slane %v102_v24, %v4930_v18 }
   0xf   :  { %v116_v29 = vrot.slane %v94_v23, %v4925_v16  ;;  %v144_v48 = vcombine.high %v142_v34, %v142_v34  ;;  %v158_v49 = vrot.slane %v142_v34, %v4925_v16  ;;  %v212_v53 = vrot.slane %v151_v33, %v4930_v18 }
  0x10   :  { %4602 = vmatpush3.bf16.msra.mxu0 %v4599_v10  ;;  %4748 = vmatpush3.bf16.msra.mxu1 %v4599_v10  ;;  %v196_v30 = vrot.slane %v109_v25, %v4930_v18  ;;  %v123_v31 = vrot.slane %v95_v26, %v4925_v16  ;;  %v125_v32 = vcombine.high %v109_v25, %v109_v25 }
  0x11   :  { %4604 = vmatprep.subr.bf16.mxu1 %v4933_v20  ;;  %v257_v35 = vsub.f32 %v180_v28, %v4906_v8  ;;  %v184_v36 = vrot.slane %v116_v29, %v4930_v18  ;;  %v188_v37 = vrot.slane %v124_v27, %v4930_v18  ;;  %v126_v38 = vcombine.high %v116_v29, %v116_v29 }
  0x12   :  { %v261_v39 = vsub.f32 %v196_v30, %v4906_v8  ;;  %v200_v40 = vrot.slane %v123_v31, %v4930_v18  ;;  %v127_v41 = vcombine.high %v123_v31, %v123_v31  ;;  %v204_v47 = vrot.slane %v125_v32, %v4930_v18 }
  0x13   :  { %v273_v43 = vand.u32 2147483647, %v257_v35  ;;  %v258_v44 = vsub.f32 %v184_v36, %v4906_v8  ;;  %v259_v45 = vsub.f32 %v188_v37, %v4906_v8  ;;  %v192_v46 = vrot.slane %v126_v38, %v4930_v18  ;;  %v522_v35 = vld [vmem:[%s5695_s24 + $0x18] sm:$0xff]  ;;  %v748_v37 = vld [vmem:[%s5696_s6] sm:$0xff]  ;;  %v749_v38 = vld [vmem:[%s5696_s6 + $0x8] sm:$0xff] }
  0x14   :  { %v262_v54 = vsub.f32 %v200_v40, %v4906_v8  ;;  %v208_v55 = vrot.slane %v127_v41, %v4930_v18  ;;  %v277_v57 = vand.u32 2147483647, %v261_v39  ;;  %v165_v58 = vrot.slane %v143_v42, %v4925_v16  ;;  %v750_v39 = vld [vmem:[%s5696_s6 + $0x10] sm:$0xff]  ;;  %v751_v41 = vld [vmem:[%s5696_s6 + $0x18] sm:$0xff] }
  0x15   :  { %4225 = vmatprep.mubr.msk.f32.mxu0 %vm293_vm0, %v273_v43  ;;  %v274_v50 = vand.u32 2147483647, %v258_v44  ;;  %v275_v51 = vand.u32 2147483647, %v259_v45  ;;  %v260_v52 = vsub.f32 %v192_v46, %v4906_v8  ;;  %v263_v59 = vsub.f32 %v204_v47, %v4906_v8  ;;  %v752_v43 = vld [vmem:[%s5696_s6 + $0x20] sm:$0xff]  ;;  %v753_v44 = vld [vmem:[%s5696_s6 + $0x28] sm:$0xff] }
  0x16   :  { %v173_v60 = vcombine.high %v151_v33, %v151_v33  ;;  %v174_v61 = vcombine.high %v158_v49, %v158_v49  ;;  %v228_v62 = vrot.slane %v158_v49, %v4930_v18  ;;  %v265_v63 = vsub.f32 %v212_v53, %v4922_v15 }
  0x17   :  { %4226 = vmatmul.mubr.msk.f32.vlgmr.msra.gmra.mrb[0].mxu0 %vm293_vm0, %v274_v50  ;;  %v276_v56 = vand.u32 2147483647, %v260_v52  ;;  %v172_v1 = vrot.slane %v144_v48, %v4925_v16  ;;  %v278_v2 = vand.u32 2147483647, %v262_v54  ;;  %v264_v3 = vsub.f32 %v208_v55, %v4906_v8 }
  0x18   :  { %4228 = vmatprep.mubr.msk.f32.mxu0 %vm293_vm0, %v275_v51  ;;  %v269_v4 = vsub.f32 %v228_v62, %v4922_v15  ;;  %v236_v5 = vrot.slane %v174_v61, %v4930_v18  ;;  %v216_v6 = vrot.slane %v165_v58, %v4930_v18  ;;  %v175_v7 = vcombine.high %v165_v58, %v165_v58 }
  0x19   :  { %v232_v10 = vrot.slane %v172_v1, %v4930_v18  ;;  %v176_v11 = vcombine.high %v172_v1, %v172_v1  ;;  %v279_v12 = vand.u32 2147483647, %v263_v59  ;;  %v220_v13 = vrot.slane %v173_v60, %v4930_v18 }
  0x1a   :  { %v285_v14 = vand.u32 2147483647, %v269_v4  ;;  %v271_v17 = vsub.f32 %v236_v5, %v4922_v15  ;;  %v280_v22 = vand.u32 2147483647, %v264_v3  ;;  %v266_v24 = vsub.f32 %v216_v6, %v4922_v15 }
  0x1b   :  { %4229 = vmatmul.mubr.msk.f32.gmra.mrb[2].mxu0 %vm293_vm0, %v276_v56  ;;  %v270_v19 = vsub.f32 %v232_v10, %v4922_v15  ;;  %v240_v21 = vrot.slane %v176_v11, %v4930_v18  ;;  %v224_v25 = vrot.slane %v175_v7, %v4930_v18  ;;  %v281_v28 = vand.u32 2147483647, %v265_v63 }
  0x1c   :  { %4231 = vmatprep.mubr.msk.f32.mxu0 %vm293_vm0, %v277_v57  ;;  %4243 = vmatprep.mubr.msk.f32.mxu1 %vm293_vm0, %v285_v14  ;;  %v287_v23 = vand.u32 2147483647, %v271_v17  ;;  %v267_v29 = vsub.f32 %v220_v13, %v4922_v15  ;;  %v282_v31 = vand.u32 2147483647, %v266_v24  ;;  %v4611_v40 = vpack.c.bf16 %v749_v38, %v748_v37  ;;  %v981_v37 = vld [vmem:[%s5697_s30 + $0x8] sm:$0xff]  ;;  %v982_v38 = vld [vmem:[%s5697_s30 + $0x10] sm:$0xff] }
  0x1d   :  { %v286_v26 = vand.u32 2147483647, %v270_v19  ;;  %v272_v27 = vsub.f32 %v240_v21, %v4922_v15  ;;  %v268_v32 = vsub.f32 %v224_v25, %v4922_v15  ;;  %v4615_v42 = vpack.c.bf16 %v751_v41, %v750_v39 }
  0x1e   :  { %v283_v33 = vand.u32 2147483647, %v267_v29  ;;  %4612 = vmatprep.subr.bf16.mxu0 %v4611_v40  ;;  %v4619_v45 = vpack.c.bf16 %v753_v44, %v752_v43  ;;  %v985_v43 = vld [vmem:[%s5697_s30 + $0x28] sm:$0xff] }
  0x1f   :  { %4232 = vmatmul.mubr.msk.f32.gmra.mrb[4].mxu0 %vm293_vm0, %v278_v2  ;;  %4244 = vmatmul.mubr.msk.f32.vlgmr.msra.gmra.mrb[0].mxu1 %vm293_vm0, %v286_v26  ;;  %v288_v30 = vand.u32 2147483647, %v272_v27  ;;  %v284_v34 = vand.u32 2147483647, %v268_v32 }
  0x20   :  { %4234 = vmatprep.mubr.msk.f32.mxu0 %vm293_vm0, %v279_v12  ;;  %4246 = vmatprep.mubr.msk.f32.mxu1 %vm293_vm0, %v287_v23 }
  0x21   :  { %4606 = vmatpush3.bf16.msra.mxu1 %v4933_v20  ;;  %v521_v20 = vld [vmem:[%s5695_s24 + $0x10] sm:$0xff]  ;;  %4614 = vmatpush3.bf16.msra.mxu0 %v4611_v40  ;;  %v983_v40 = vld [vmem:[%s5697_s30 + $0x18] sm:$0xff] }
  0x22   :  { %v4607_v36 = vpack.c.bf16 %v522_v35, %v521_v20  ;;  %4616 = vmatprep.subr.bf16.mxu0 %v4615_v42  ;;  %v4627_v41 = vpack.c.bf16 %v983_v40, %v982_v38 }
  0x23   :  { %4235 = vmatmul.mubr.msk.f32.gmra.mrb[6].mxu0 %vm293_vm0, %v280_v22  ;;  %4247 = vmatmul.mubr.msk.f32.gmra.mrb[2].mxu1 %vm293_vm0, %v288_v30 }
  0x24   :  { %4237 = vmatprep.mubr.msk.f32.mxu0 %vm293_vm0, %v281_v28  ;;  %4608 = vmatprep.subr.bf16.mxu1 %v4607_v36 }
  0x25   :  { %4610 = vmatpush3.bf16.msra.mxu1 %v4607_v36  ;;  %4618 = vmatpush3.bf16.msra.mxu0 %v4615_v42  ;;  %v980_v36 = vld [vmem:[%s5697_s30] sm:$0xff] }
  0x26   :  { %4620 = vmatprep.subr.bf16.mxu0 %v4619_v45  ;;  %v4623_v39 = vpack.c.bf16 %v981_v37, %v980_v36  ;;  %v984_v42 = vld [vmem:[%s5697_s30 + $0x20] sm:$0xff] }
  0x27   :  { %4238 = vmatmul.mubr.msk.f32.gmra.mrb[8].mxu0 %vm293_vm0, %v282_v31  ;;  %v4631_v44 = vpack.c.bf16 %v985_v43, %v984_v42 }
  0x28   :  { %4240 = vmatprep.mubr.msk.f32.mxu0 %vm293_vm0, %v283_v33  ;;  %4624 = vmatprep.subr.bf16.mxu1 %v4623_v39 }
  0x29   :  { %4622 = vmatpush3.bf16.msra.mxu0 %v4619_v45 }
  0x2b   :  { %4241 = vmatmul.mubr.msk.f32.gmra.mrb[10].mxu0 %vm293_vm0, %v284_v34 }
  0xea   :  { %v4227_v46 = vpop.f32.mrb[0].mxu0 }
  0xeb   :  { %v488_v47 = vmul.f32 0.2, %v4227_v46  ;;  %v408_v48 = vpop.f32.mrb[1].mxu0 }
  0xec   :  { %v487_v49 = vmul.f32 0.2, %v408_v48 }
  0xed   :  { %v504_v52 = vmax.f32 %v4227_v46, %v488_v47 }
  0xee   :  { %v503_v50 = vmax.f32 %v408_v48, %v487_v49  ;;  %v4230_v51 = vpop.f32.mrb[2].mxu0 }
  0xef   :  { %v490_v53 = vmul.f32 0.2, %v4230_v51  ;;  %v418_v54 = vpop.f32.mrb[3].mxu0 }
  0xf0   :  { %v489_v55 = vmul.f32 0.2, %v418_v54  ;;  %4257 = vmatprep.mubr.msk.f32.mxu1 %vm293_vm0, %v503_v50 }
  0xf1   :  { %4258 = vmatmul.mubr.msk.f32.vlgmr.msra.gmra.mrb[4].mxu1 %vm293_vm0, %v504_v52  ;;  %v506_v58 = vmax.f32 %v4230_v51, %v490_v53 }
  0xf2   :  { %v505_v56 = vmax.f32 %v418_v54, %v489_v55  ;;  %v4233_v57 = vpop.f32.mrb[4].mxu0  ;;  %v4245_v62 = vpop.f32.mrb[0].mxu1  ;;  %4626 = vmatpush3.bf16.msra.mxu1 %v4623_v39 }
  0xf3   :  { %v492_v59 = vmul.f32 0.2, %v4233_v57  ;;  %v428_v60 = vpop.f32.mrb[5].mxu0  ;;  %v468_v63 = vpop.f32.mrb[1].mxu1  ;;  %v500_v29 = vmul.f32 0.2, %v4245_v62  ;;  %4628 = vmatprep.subr.bf16.mxu1 %v4627_v41 }
  0xf4   :  { %v491_v61 = vmul.f32 0.2, %v428_v60  ;;  %4260 = vmatprep.mubr.msk.f32.mxu1 %vm293_vm0, %v505_v56  ;;  %v499_v24 = vmul.f32 0.2, %v468_v63 }
  0xf5   :  { %4261 = vmatmul.mubr.msk.f32.gmra.mrb[6].mxu1 %vm293_vm0, %v506_v58  ;;  %v508_v3 = vmax.f32 %v4233_v57, %v492_v59  ;;  %v516_v33 = vmax.f32 %v4245_v62, %v500_v29 }
  0xf6   :  { %v507_v1 = vmax.f32 %v428_v60, %v491_v61  ;;  %v4236_v2 = vpop.f32.mrb[6].mxu0  ;;  %v4248_v7 = vpop.f32.mrb[2].mxu1  ;;  %v515_v31 = vmax.f32 %v468_v63, %v499_v24  ;;  %4630 = vmatpush3.bf16.msra.mxu1 %v4627_v41 }
  0xf7   :  { %v494_v4 = vmul.f32 0.2, %v4236_v2  ;;  %v438_v5 = vpop.f32.mrb[7].mxu0  ;;  %v478_v10 = vpop.f32.mrb[3].mxu1  ;;  %v502_v34 = vmul.f32 0.2, %v4248_v7  ;;  %4632 = vmatprep.subr.bf16.mxu1 %v4631_v44 }
  0xf8   :  { %v493_v6 = vmul.f32 0.2, %v438_v5  ;;  %4263 = vmatprep.mubr.msk.f32.mxu1 %vm293_vm0, %v507_v1  ;;  %v501_v32 = vmul.f32 0.2, %v478_v10 }
  0xf9   :  { %4264 = vmatmul.mubr.msk.f32.gmra.mrb[8].mxu1 %vm293_vm0, %v508_v3  ;;  %v510_v13 = vmax.f32 %v4236_v2, %v494_v4  ;;  %v518_v35 = vmax.f32 %v4248_v7, %v502_v34 }
  0xfa   :  { %v509_v11 = vmax.f32 %v438_v5, %v493_v6  ;;  %v4239_v12 = vpop.f32.mrb[8].mxu0  ;;  %v517_v20 = vmax.f32 %v478_v10, %v501_v32  ;;  %4634 = vmatpush3.bf16.msra.mxu1 %v4631_v44 }
  0xfb   :  { %v496_v14 = vmul.f32 0.2, %v4239_v12  ;;  %v448_v17 = vpop.f32.mrb[9].mxu0 }
  0xfc   :  { %v495_v19 = vmul.f32 0.2, %v448_v17  ;;  %4266 = vmatprep.mubr.msk.f32.mxu1 %vm293_vm0, %v509_v11 }
  0xfd   :  { %v512_v21 = vmax.f32 %v4239_v12, %v496_v14  ;;  %4267 = vmatmul.mubr.msk.f32.gmra.mrb[10].mxu1 %vm293_vm0, %v510_v13 }
  0xfe   :  { %v511_v22 = vmax.f32 %v448_v17, %v495_v19  ;;  %v4242_v23 = vpop.f32.mrb[10].mxu0 }
  0xff   :  { %v498_v25 = vmul.f32 0.2, %v4242_v23  ;;  %v458_v26 = vpop.f32.mrb[11].mxu0 }
 0x100   :  { %v497_v27 = vmul.f32 0.2, %v458_v26  ;;  %4269 = vmatprep.mubr.msk.f32.mxu1 %vm293_vm0, %v511_v22 }
 0x101   :  { %v514_v28 = vmax.f32 %v4242_v23, %v498_v25  ;;  %4270 = vmatmul.mubr.msk.f32.gmra.mrb[12].mxu1 %vm293_vm0, %v512_v21 }
 0x102   :  { %v513_v30 = vmax.f32 %v458_v26, %v497_v27 }
 0x104   :  { %4272 = vmatprep.mubr.msk.f32.mxu1 %vm293_vm0, %v513_v30 }
 0x105   :  { %4273 = vmatmul.mubr.msk.f32.gmra.mrb[14].mxu1 %vm293_vm0, %v514_v28 }
 0x106   :  { %4275 = vmatprep.mubr.msk.f32.mxu1 %vm293_vm0, %v515_v31 }
 0x109   :  { %4276 = vmatmul.mubr.msk.f32.gmra.mrb[16].mxu1 %vm293_vm0, %v516_v33 }
 0x10a   :  { %4278 = vmatprep.mubr.msk.f32.mxu1 %vm293_vm0, %v517_v20 }
 0x10d   :  { %4279 = vmatmul.mubr.msk.f32.gmra.mrb[18].mxu1 %vm293_vm0, %v518_v35 }
 0x1c4   :  { %v4259_v45 = vpop.f32.mrb[4].mxu1 }
 0x1c5   :  { %v717_v46 = vmul.f32 0.2, %v4259_v45  ;;  %v637_v47 = vpop.f32.mrb[5].mxu1 }
 0x1c6   :  { %v716_v48 = vmul.f32 0.2, %v637_v47 }
 0x1c7   :  { %v733_v51 = vmax.f32 %v4259_v45, %v717_v46 }
 0x1c8   :  { %v732_v49 = vmax.f32 %v637_v47, %v716_v48  ;;  %v4262_v50 = vpop.f32.mrb[6].mxu1 }
 0x1c9   :  { %v719_v52 = vmul.f32 0.2, %v4262_v50  ;;  %v647_v53 = vpop.f32.mrb[7].mxu1 }
 0x1ca   :  { %v718_v54 = vmul.f32 0.2, %v647_v53  ;;  %4293 = vmatprep.mubr.msk.f32.mxu0 %vm754_vm1, %v732_v49 }
 0x1cb   :  { %4294 = vmatmul.mubr.msk.f32.vlgmr.msra.gmra.mrb[12].mxu0 %vm754_vm1, %v733_v51  ;;  %v735_v57 = vmax.f32 %v4262_v50, %v719_v52 }
 0x1cc   :  { %v734_v55 = vmax.f32 %v647_v53, %v718_v54  ;;  %v4265_v56 = vpop.f32.mrb[8].mxu1 }
 0x1cd   :  { %v721_v58 = vmul.f32 0.2, %v4265_v56  ;;  %v657_v59 = vpop.f32.mrb[9].mxu1 }
 0x1ce   :  { %v720_v60 = vmul.f32 0.2, %v657_v59  ;;  %4296 = vmatprep.mubr.msk.f32.mxu0 %vm754_vm1, %v734_v55 }
 0x1cf   :  { %4297 = vmatmul.mubr.msk.f32.gmra.mrb[14].mxu0 %vm754_vm1, %v735_v57  ;;  %v737_v63 = vmax.f32 %v4265_v56, %v721_v58 }
 0x1d0   :  { %v736_v61 = vmax.f32 %v657_v59, %v720_v60  ;;  %v4268_v62 = vpop.f32.mrb[10].mxu1 }
 0x1d1   :  { %v723_v1 = vmul.f32 0.2, %v4268_v62  ;;  %v667_v2 = vpop.f32.mrb[11].mxu1 }
 0x1d2   :  { %v722_v3 = vmul.f32 0.2, %v667_v2  ;;  %4299 = vmatprep.mubr.msk.f32.mxu0 %vm754_vm1, %v736_v61 }
 0x1d3   :  { %4300 = vmatmul.mubr.msk.f32.gmra.mrb[16].mxu0 %vm754_vm1, %v737_v63  ;;  %v739_v6 = vmax.f32 %v4268_v62, %v723_v1 }
 0x1d4   :  { %v738_v4 = vmax.f32 %v667_v2, %v722_v3  ;;  %v4271_v5 = vpop.f32.mrb[12].mxu1 }
 0x1d5   :  { %v725_v7 = vmul.f32 0.2, %v4271_v5  ;;  %v677_v10 = vpop.f32.mrb[13].mxu1 }
 0x1d6   :  { %v724_v11 = vmul.f32 0.2, %v677_v10  ;;  %4302 = vmatprep.mubr.msk.f32.mxu0 %vm754_vm1, %v738_v4 }
 0x1d7   :  { %v741_v12 = vmax.f32 %v4271_v5, %v725_v7  ;;  %4303 = vmatmul.mubr.msk.f32.gmra.mrb[18].mxu0 %vm754_vm1, %v739_v6 }
 0x1d8   :  { %v740_v13 = vmax.f32 %v677_v10, %v724_v11  ;;  %v4274_v14 = vpop.f32.mrb[14].mxu1 }
 0x1d9   :  { %v727_v17 = vmul.f32 0.2, %v4274_v14  ;;  %v687_v19 = vpop.f32.mrb[15].mxu1 }
 0x1da   :  { %v726_v21 = vmul.f32 0.2, %v687_v19  ;;  %4305 = vmatprep.mubr.msk.f32.mxu0 %vm754_vm1, %v740_v13 }
 0x1db   :  { %v743_v22 = vmax.f32 %v4274_v14, %v727_v17  ;;  %4306 = vmatmul.mubr.msk.f32.gmra.mrb[20].mxu0 %vm754_vm1, %v741_v12 }
 0x1dc   :  { %v742_v23 = vmax.f32 %v687_v19, %v726_v21  ;;  %v4277_v24 = vpop.f32.mrb[16].mxu1 }
 0x1dd   :  { %v729_v25 = vmul.f32 0.2, %v4277_v24  ;;  %v697_v26 = vpop.f32.mrb[17].mxu1 }
 0x1de   :  { %v728_v27 = vmul.f32 0.2, %v697_v26  ;;  %4308 = vmatprep.mubr.msk.f32.mxu0 %vm754_vm1, %v742_v23 }
 0x1df   :  { %v745_v28 = vmax.f32 %v4277_v24, %v729_v25  ;;  %4309 = vmatmul.mubr.msk.f32.gmra.mrb[22].mxu0 %vm754_vm1, %v743_v22 }
 0x1e0   :  { %v744_v29 = vmax.f32 %v697_v26, %v728_v27  ;;  %v4280_v30 = vpop.f32.mrb[18].mxu1 }
 0x1e1   :  { %v731_v31 = vmul.f32 0.2, %v4280_v30  ;;  %v707_v32 = vpop.f32.mrb[19].mxu1 }
 0x1e2   :  { %v730_v33 = vmul.f32 0.2, %v707_v32  ;;  %4311 = vmatprep.mubr.msk.f32.mxu0 %vm754_vm1, %v744_v29  ;;  %v5093_v29 = vld [vmem:[%s5698_s5] ss:$0 sm:$0xff]  ;;  %s4779_s5 = smov 16  }
 0x1e3   :  { %v747_v34 = vmax.f32 %v4280_v30, %v731_v31  ;;  %4312 = vmatmul.mubr.msk.f32.gmra.mrb[24].mxu0 %vm754_vm1, %v745_v28 }
 0x1e4   :  { %v746_v20 = vmax.f32 %v707_v32, %v730_v33 }
 0x1e6   :  { %4314 = vmatprep.mubr.msk.f32.mxu0 %vm754_vm1, %v746_v20 }
 0x1e7   :  { %4315 = vmatmul.mubr.msk.f32.gmra.mrb[26].mxu0 %vm754_vm1, %v747_v34 }
 0x1e8   :  { %4361 = vmatprep.mubr.msk.f32.mxu0 %vm293_vm0, %v4906_v8 }
 0x29e   :  { %v4295_v35 = vpop.f32.mrb[12].mxu0 }
 0x29f   :  { %v949_v36 = vmul.f32 0.2, %v4295_v35  ;;  %v869_v37 = vpop.f32.mrb[13].mxu0 }
 0x2a0   :  { %v948_v38 = vmul.f32 0.2, %v869_v37 }
 0x2a1   :  { %v965_v41 = vmax.f32 %v4295_v35, %v949_v36 }
 0x2a2   :  { %v964_v39 = vmax.f32 %v869_v37, %v948_v38  ;;  %v4298_v40 = vpop.f32.mrb[14].mxu0 }
 0x2a3   :  { %v951_v42 = vmul.f32 0.2, %v4298_v40  ;;  %v879_v43 = vpop.f32.mrb[15].mxu0 }
 0x2a4   :  { %v950_v44 = vmul.f32 0.2, %v879_v43  ;;  %4329 = vmatprep.mubr.msk.f32.mxu1 %vm754_vm1, %v964_v39 }
 0x2a5   :  { %4330 = vmatmul.mubr.msk.f32.vlgmr.msra.gmra.mrb[20].mxu1 %vm754_vm1, %v965_v41  ;;  %v967_v47 = vmax.f32 %v4298_v40, %v951_v42 }
 0x2a6   :  { %v966_v45 = vmax.f32 %v879_v43, %v950_v44  ;;  %v4301_v46 = vpop.f32.mrb[16].mxu0 }
 0x2a7   :  { %v953_v48 = vmul.f32 0.2, %v4301_v46  ;;  %v889_v49 = vpop.f32.mrb[17].mxu0 }
 0x2a8   :  { %v952_v8 = vmul.f32 0.2, %v889_v49  ;;  %4332 = vmatprep.mubr.msk.f32.mxu1 %vm754_vm1, %v966_v45 }
 0x2a9   :  { %4333 = vmatmul.mubr.msk.f32.gmra.mrb[22].mxu1 %vm754_vm1, %v967_v47  ;;  %v969_v52 = vmax.f32 %v4301_v46, %v953_v48 }
 0x2aa   :  { %v968_v50 = vmax.f32 %v889_v49, %v952_v8  ;;  %v4304_v51 = vpop.f32.mrb[18].mxu0 }
 0x2ab   :  { %v955_v53 = vmul.f32 0.2, %v4304_v51  ;;  %v899_v54 = vpop.f32.mrb[19].mxu0 }
 0x2ac   :  { %v954_v55 = vmul.f32 0.2, %v899_v54  ;;  %4335 = vmatprep.mubr.msk.f32.mxu1 %vm754_vm1, %v968_v50 }
 0x2ad   :  { %4336 = vmatmul.mubr.msk.f32.gmra.mrb[24].mxu1 %vm754_vm1, %v969_v52  ;;  %v971_v58 = vmax.f32 %v4304_v51, %v955_v53 }
 0x2ae   :  { %v970_v56 = vmax.f32 %v899_v54, %v954_v55  ;;  %v4307_v57 = vpop.f32.mrb[20].mxu0 }
 0x2af   :  { %v957_v59 = vmul.f32 0.2, %v4307_v57  ;;  %v909_v60 = vpop.f32.mrb[21].mxu0 }
 0x2b0   :  { %v956_v61 = vmul.f32 0.2, %v909_v60  ;;  %4338 = vmatprep.mubr.msk.f32.mxu1 %vm754_vm1, %v970_v56 }
 0x2b1   :  { %4339 = vmatmul.mubr.msk.f32.gmra.mrb[26].mxu1 %vm754_vm1, %v971_v58  ;;  %v973_v1 = vmax.f32 %v4307_v57, %v957_v59 }
 0x2b2   :  { %v972_v62 = vmax.f32 %v909_v60, %v956_v61  ;;  %v4310_v63 = vpop.f32.mrb[22].mxu0 }
 0x2b3   :  { %v959_v2 = vmul.f32 0.2, %v4310_v63  ;;  %v919_v3 = vpop.f32.mrb[23].mxu0 }
 0x2b4   :  { %v958_v4 = vmul.f32 0.2, %v919_v3  ;;  %4341 = vmatprep.mubr.msk.f32.mxu1 %vm754_vm1, %v972_v62 }
 0x2b5   :  { %4342 = vmatmul.mubr.msk.f32.gmra.mrb[28].mxu1 %vm754_vm1, %v973_v1  ;;  %v975_v7 = vmax.f32 %v4310_v63, %v959_v2 }
 0x2b6   :  { %v974_v5 = vmax.f32 %v919_v3, %v958_v4  ;;  %v4313_v6 = vpop.f32.mrb[24].mxu0 }
 0x2b7   :  { %v961_v10 = vmul.f32 0.2, %v4313_v6  ;;  %v929_v11 = vpop.f32.mrb[25].mxu0 }
 0x2b8   :  { %v960_v12 = vmul.f32 0.2, %v929_v11  ;;  %4344 = vmatprep.mubr.msk.f32.mxu1 %vm754_vm1, %v974_v5 }
 0x2b9   :  { %4345 = vmatmul.mubr.msk.f32.gmra.mrb[30].mxu1 %vm754_vm1, %v975_v7  ;;  %v977_v17 = vmax.f32 %v4313_v6, %v961_v10 }
 0x2ba   :  { %v976_v13 = vmax.f32 %v929_v11, %v960_v12  ;;  %v4316_v14 = vpop.f32.mrb[26].mxu0 }
 0x2bb   :  { %v963_v19 = vmul.f32 0.2, %v4316_v14  ;;  %v939_v21 = vpop.f32.mrb[27].mxu0 }
 0x2bc   :  { %v962_v22 = vmul.f32 0.2, %v939_v21  ;;  %4347 = vmatprep.mubr.msk.f32.mxu1 %vm754_vm1, %v976_v13 }
 0x2bd   :  { %4348 = vmatmul.mubr.msk.f32.gmra.mrb[32].mxu1 %vm754_vm1, %v977_v17  ;;  %v979_v24 = vmax.f32 %v4316_v14, %v963_v19 }
 0x2be   :  { %v978_v23 = vmax.f32 %v939_v21, %v962_v22 }
 0x2c0   :  { %4350 = vmatprep.mubr.msk.f32.mxu1 %vm754_vm1, %v978_v23 }
 0x2c1   :  { %4351 = vmatmul.mubr.msk.f32.gmra.mrb[34].mxu1 %vm754_vm1, %v979_v24 }
 0x378   :  { %v4331_v25 = vpop.f32.mrb[20].mxu1 }
 0x379   :  { %v1180_v26 = vmul.f32 0.2, %v4331_v25  ;;  %v1100_v27 = vpop.f32.mrb[21].mxu1 }
 0x37a   :  { %v1179_v28 = vmul.f32 0.2, %v1100_v27 }
 0x37b   :  { %v1196_v30 = vmax.f32 %v4331_v25, %v1180_v26 }
 0x37c   :  { %v1195_v31 = vmax.f32 %v1100_v27, %v1179_v28  ;;  %v4334_v32 = vpop.f32.mrb[22].mxu1 }
 0x37d   :  { %v1182_v33 = vmul.f32 0.2, %v4334_v32  ;;  %v1110_v34 = vpop.f32.mrb[23].mxu1  ;;  %v1219_v20 = vmul.f32 %v5093_v29, %v1196_v30 }
 0x37e   :  { %v1181_v35 = vmul.f32 0.2, %v1110_v34  ;;  %v1218_v38 = vmul.f32 %v5093_v29, %v1195_v31 }
 0x37f   :  { %v1198_v36 = vmax.f32 %v4334_v32, %v1182_v33  ;;  %v1237_v37 = vsel %vm293_vm0, %v1219_v20, 0.0 }
 0x380   :  { %v1197_v39 = vmax.f32 %v1110_v34, %v1181_v35  ;;  %1238 = vadd.xlane.f32.xlu0 %v1237_v37  ;;  %v4337_v40 = vpop.f32.mrb[24].mxu1  ;;  %v1234_v46 = vsel %vm293_vm0, %v1218_v38, 0.0 }
 0x381   :  { %v1184_v41 = vmul.f32 0.2, %v4337_v40  ;;  %v1120_v42 = vpop.f32.mrb[25].mxu1  ;;  %v1221_v43 = vmul.f32 %v5093_v29, %v1198_v36 }
 0x382   :  { %v1183_v44 = vmul.f32 0.2, %v1120_v42  ;;  %v1220_v48 = vmul.f32 %v5093_v29, %v1197_v39 }
 0x383   :  { %v1200_v45 = vmax.f32 %v4337_v40, %v1184_v41  ;;  %v1243_v47 = vsel %vm293_vm0, %v1221_v43, 0.0 }
 0x384   :  { %v1199_v49 = vmax.f32 %v1120_v42, %v1183_v44  ;;  %1235 = vadd.xlane.f32.xlu0 %v1234_v46  ;;  %1244 = vadd.xlane.f32.xlu1 %v1243_v47  ;;  %v4340_v8 = vpop.f32.mrb[26].mxu1  ;;  %v1240_v55 = vsel %vm293_vm0, %v1220_v48, 0.0  ;;  %v1522_v47 = vld [vmem:[%s5666_s7] sm:$0xff]  ;;  %v1523_v48 = vld [vmem:[%s5666_s7 + $0x8] sm:$0xff] }
 0x385   :  { %v1186_v50 = vmul.f32 0.2, %v4340_v8  ;;  %v1130_v51 = vpop.f32.mrb[27].mxu1  ;;  %v1223_v56 = vmul.f32 %v5093_v29, %v1200_v45 }
 0x386   :  { %v1185_v52 = vmul.f32 0.2, %v1130_v51  ;;  %v1222_v53 = vmul.f32 %v5093_v29, %v1199_v49  ;;  %v1524_v49 = vld [vmem:[%s5666_s7 + $0x10] sm:$0xff] }
 0x387   :  { %v1202_v54 = vmax.f32 %v4340_v8, %v1186_v50  ;;  %v1249_v2 = vsel %vm293_vm0, %v1223_v56, 0.0  ;;  %v1525_v8 = vld [vmem:[%s5666_s7 + $0x18] sm:$0xff] }
 0x388   :  { %v1201_v57 = vmax.f32 %v1130_v51, %v1185_v52  ;;  %1241 = vadd.xlane.f32.xlu1 %v1240_v55  ;;  %v4343_v58 = vpop.f32.mrb[28].mxu1  ;;  %v1246_v59 = vsel %vm293_vm0, %v1222_v53, 0.0  ;;  %v4639_v50 = vpack.c.bf16 %v1525_v8, %v1524_v49  ;;  %v5142_v51 = vand.u32 127, %v72_v0 }
 0x389   :  { %v1188_v60 = vmul.f32 0.2, %v4343_v58  ;;  %1247 = vadd.xlane.f32.xlu0 %v1246_v59  ;;  %v1140_v61 = vpop.f32.mrb[29].mxu1  ;;  %v1225_v3 = vmul.f32 %v5093_v29, %v1202_v54 }
 0x38a   :  { %v1187_v62 = vmul.f32 0.2, %v1140_v61  ;;  %v1224_v63 = vmul.f32 %v5093_v29, %v1201_v57  ;;  %v5146_v53 = vsub.s32 %v5142_v51, %v4909_v9  ;;  %vm76_vm9 = vcmp.eq.s32.totalorder %v4909_v9, %v5142_v51  ;;  %v3518_v9 = vld [vmem:[%s5675_s16] sm:$0xff]  ;;  %v3519_v51 = vld [vmem:[%s5675_s16 + $0x8] sm:$0xff] }
 0x38b   :  { %v1204_v1 = vmax.f32 %v4343_v58, %v1188_v60  ;;  %v1255_v14 = vsel %vm293_vm0, %v1225_v3, 0.0 }
 0x38c   :  { %v1203_v4 = vmax.f32 %v1140_v61, %v1187_v62  ;;  %1250 = vadd.xlane.f32.xlu1 %v1249_v2  ;;  %v4346_v5 = vpop.f32.mrb[30].mxu1  ;;  %v1252_v6 = vsel %vm293_vm0, %v1224_v63, 0.0 }
 0x38d   :  { %v1190_v7 = vmul.f32 0.2, %v4346_v5  ;;  %1253 = vadd.xlane.f32.xlu0 %v1252_v6  ;;  %v1150_v10 = vpop.f32.mrb[31].mxu1  ;;  %v1227_v17 = vmul.f32 %v5093_v29, %v1204_v1 }
 0x38e   :  { %v1189_v11 = vmul.f32 0.2, %v1150_v10  ;;  %v1226_v12 = vmul.f32 %v5093_v29, %v1203_v4 }
 0x38f   :  { %v1206_v13 = vmax.f32 %v4346_v5, %v1190_v7  ;;  %v1261_v28 = vsel %vm293_vm0, %v1227_v17, 0.0 }
 0x390   :  { %v1205_v19 = vmax.f32 %v1150_v10, %v1189_v11  ;;  %1256 = vadd.xlane.f32.xlu1 %v1255_v14  ;;  %v4349_v21 = vpop.f32.mrb[32].mxu1  ;;  %v1258_v22 = vsel %vm293_vm0, %v1226_v12, 0.0 }
 0x391   :  { %v1192_v23 = vmul.f32 0.2, %v4349_v21  ;;  %1259 = vadd.xlane.f32.xlu0 %v1258_v22  ;;  %v1160_v24 = vpop.f32.mrb[33].mxu1  ;;  %v1229_v30 = vmul.f32 %v5093_v29, %v1206_v13 }
 0x392   :  { %v1191_v25 = vmul.f32 0.2, %v1160_v24  ;;  %v1228_v26 = vmul.f32 %v5093_v29, %v1205_v19 }
 0x393   :  { %v1208_v27 = vmax.f32 %v4349_v21, %v1192_v23  ;;  %v1267_v38 = vsel %vm293_vm0, %v1229_v30, 0.0 }
 0x394   :  { %v1207_v31 = vmax.f32 %v1160_v24, %v1191_v25  ;;  %1262 = vadd.xlane.f32.xlu1 %v1261_v28  ;;  %v4352_v32 = vpop.f32.mrb[34].mxu1  ;;  %v1264_v33 = vsel %vm293_vm0, %v1228_v26, 0.0 }
 0x395   :  { %v1194_v34 = vmul.f32 0.2, %v4352_v32  ;;  %1265 = vadd.xlane.f32.xlu0 %v1264_v33  ;;  %v1170_v20 = vpop.f32.mrb[35].mxu1  ;;  %v1231_v39 = vmul.f32 %v5093_v29, %v1208_v27 }
 0x396   :  { %v1193_v35 = vmul.f32 0.2, %v1170_v20  ;;  %v1230_v36 = vmul.f32 %v5093_v29, %v1207_v31 }
 0x397   :  { %v1210_v37 = vmax.f32 %v4352_v32, %v1194_v34  ;;  %v1273_v43 = vsel %vm293_vm0, %v1231_v39, 0.0 }
 0x398   :  { %v1209_v40 = vmax.f32 %v1170_v20, %v1193_v35  ;;  %1268 = vadd.xlane.f32.xlu1 %v1267_v38  ;;  %v1270_v41 = vsel %vm293_vm0, %v1230_v36, 0.0 }
 0x399   :  { %1271 = vadd.xlane.f32.xlu0 %v1270_v41  ;;  %v1233_v44 = vmul.f32 %v5093_v29, %v1210_v37 }
 0x39a   :  { %v1232_v42 = vmul.f32 %v5093_v29, %v1209_v40  ;;  %v4635_v29 = vpack.c.bf16 %v1523_v48, %v1522_v47 }
 0x39b   :  { %v1279_v46 = vsel %vm293_vm0, %v1233_v44, 0.0 }
 0x39c   :  { %1274 = vadd.xlane.f32.xlu1 %v1273_v43  ;;  %v1276_v45 = vsel %vm293_vm0, %v1232_v42, 0.0  ;;  %4636 = vmatprep.subr.bf16.mxu0 %v4635_v29 }
 0x39d   :  { %1277 = vadd.xlane.f32.xlu0 %v1276_v45  ;;  %4638 = vmatpush3.bf16.msra.mxu0 %v4635_v29 }
 0x39e   :  { %4640 = vmatprep.subr.bf16.mxu0 %v4639_v50 }
 0x3a0   :  { %1280 = vadd.xlane.f32.xlu1 %v1279_v46 }
 0x3a1   :  { %4642 = vmatpush3.bf16.msra.mxu0 %v4639_v50 }
 0x3a4   :  { %4362 = vmatmul.mubr.msk.f32.vlgmr.msra.gmra.mrb[28].mxu0 %vm293_vm0, %v4922_v15 }
 0x40d   :  { %v1239_v52 = vpop.xlane.xlu0 %1238 }
 0x40e   :  { %v3879_v56 = vadd.f32 -1e+08, %v1239_v52  ;;  %v1424_v59 = vrot.slane %v1239_v52, %v5146_v53 }
 0x410   :  { %v1321_v61 = vrot.slane %v3879_v56, %v5146_v53 }
 0x411   :  { %v1236_v54 = vpop.xlane.xlu0 %1235  ;;  %v1245_v55 = vpop.xlane.xlu1 %1244 }
 0x412   :  { %v3878_v57 = vadd.f32 -1e+08, %v1236_v54  ;;  %v1420_v58 = vrot.slane %v1236_v54, %v5146_v53  ;;  %v3881_v15 = vadd.f32 -1e+08, %v1245_v55  ;;  %v1432_v3 = vrot.slane %v1245_v55, %v5146_v53 }
 0x414   :  { %v1317_v60 = vrot.slane %v3878_v57, %v5146_v53  ;;  %v1481_v2 = vsel %vm1378_vm2, %v1424_v59, %v1420_v58  ;;  %v1329_v11 = vrot.slane %v3881_v15, %v5146_v53 }
 0x415   :  { %v1242_v0 = vpop.xlane.xlu1 %1241 }
 0x416   :  { %v3880_v62 = vadd.f32 -1e+08, %v1242_v0  ;;  %v1428_v63 = vrot.slane %v1242_v0, %v5146_v53  ;;  %v1248_v1 = vpop.xlane.xlu0 %1247  ;;  %v1379_v10 = vsel %vm1378_vm2, %v1321_v61, %v1317_v60 }
 0x417   :  { %v3882_v4 = vadd.f32 -1e+08, %v1248_v1  ;;  %v1436_v5 = vrot.slane %v1248_v1, %v5146_v53 }
 0x418   :  { %v1325_v6 = vrot.slane %v3880_v62, %v5146_v53  ;;  %v1482_v7 = vsel %vm1380_vm3, %v1428_v63, %v1481_v2 }
 0x419   :  { %v1483_v12 = vsel %vm1382_vm4, %v1432_v3, %v1482_v7  ;;  %v1333_v13 = vrot.slane %v3882_v4, %v5146_v53  ;;  %v1251_v14 = vpop.xlane.xlu1 %1250 }
 0x41a   :  { %v1381_v17 = vsel %vm1380_vm3, %v1325_v6, %v1379_v10  ;;  %v3883_v19 = vadd.f32 -1e+08, %v1251_v14  ;;  %v1440_v21 = vrot.slane %v1251_v14, %v5146_v53  ;;  %v1254_v22 = vpop.xlane.xlu0 %1253  ;;  %v1484_v24 = vsel %vm1384_vm5, %v1436_v5, %v1483_v12 }
 0x41b   :  { %v1383_v23 = vsel %vm1382_vm4, %v1329_v11, %v1381_v17  ;;  %v3884_v25 = vadd.f32 -1e+08, %v1254_v22  ;;  %v1444_v30 = vrot.slane %v1254_v22, %v5146_v53 }
 0x41c   :  { %v1385_v26 = vsel %vm1384_vm5, %v1333_v13, %v1383_v23  ;;  %v1337_v27 = vrot.slane %v3883_v19, %v5146_v53  ;;  %v1485_v32 = vsel %vm1386_vm6, %v1440_v21, %v1484_v24 }
 0x41d   :  { %v1341_v28 = vrot.slane %v3884_v25, %v5146_v53  ;;  %v1257_v31 = vpop.xlane.xlu1 %1256  ;;  %v1486_v40 = vsel %vm1388_vm7, %v1444_v30, %v1485_v32  ;;  %v4777_v32 = vmov 0.0  }
 0x41e   :  { %v3885_v33 = vadd.f32 -1e+08, %v1257_v31  ;;  %v1448_v34 = vrot.slane %v1257_v31, %v5146_v53  ;;  %v1260_v20 = vpop.xlane.xlu0 %1259  ;;  %v1387_v35 = vsel %vm1386_vm6, %v1337_v27, %v1385_v26  ;;  %4364 = vmatprep.subr.mxu1 %v4777_v32  ;;  %4369 = vmatprep.subr.mxu0 %v4777_v32 }
 0x41f   :  { %v3886_v37 = vadd.f32 -1e+08, %v1260_v20  ;;  %v1389_v39 = vsel %vm1388_vm7, %v1341_v28, %v1387_v35  ;;  %v1452_v49 = vrot.slane %v1260_v20, %v5146_v53  ;;  %4366 = vmatprep.mubr.msk.f32.mxu1 %vm4778_vm11, %v4777_v32  ;;  %4371 = vmatprep.mubr.msk.f32.mxu0 %vm4778_vm11, %v4777_v32 }
 0x420   :  { %v1345_v36 = vrot.slane %v3885_v33, %v5146_v53  ;;  %v1487_v45 = vsel %vm1390_vm8, %v1448_v34, %v1486_v40 }
 0x421   :  { %v1263_v38 = vpop.xlane.xlu1 %1262  ;;  %v1349_v48 = vrot.slane %v3886_v37, %v5146_v53 }
 0x422   :  { %v3887_v41 = vadd.f32 -1e+08, %v1263_v38  ;;  %v1456_v42 = vrot.slane %v1263_v38, %v5146_v53  ;;  %v1266_v43 = vpop.xlane.xlu0 %1265  ;;  %v1391_v44 = vsel %vm1390_vm8, %v1345_v36, %v1389_v39 }
 0x423   :  { %v3888_v46 = vadd.f32 -1e+08, %v1266_v43  ;;  %v1497_v47 = vsel %vm76_vm9, %v1391_v44, %v1487_v45  ;;  %v1460_v52 = vrot.slane %v1266_v43, %v5146_v53  ;;  %v1751_v44 = vld [vmem:[%s5667_s8] sm:$0xff]  ;;  %v1752_v45 = vld [vmem:[%s5667_s8 + $0x8] sm:$0xff] }
 0x424   :  { %v1353_v29 = vrot.slane %v3887_v41, %v5146_v53  ;;  %v1500_v8 = vsel %vm1499_vm10, %v1497_v47, -inf  ;;  %v1488_v56 = vsel %vm1378_vm2, %v1456_v42, %v1452_v49 }
 0x425   :  { %v1357_v50 = vrot.slane %v3888_v46, %v5146_v53  ;;  %v1269_v54 = vpop.xlane.xlu1 %1268  ;;  %1501 = vmax.xlane.f32.xlu0 %v1500_v8  ;;  %v1489_v61 = vsel %vm1380_vm3, %v1460_v52, %v1488_v56  ;;  %v4643_v46 = vpack.c.bf16 %v1752_v45, %v1751_v44  ;;  %v1754_v8 = vld [vmem:[%s5667_s8 + $0x18] sm:$0xff] }
 0x426   :  { %v1392_v55 = vsel %vm1378_vm2, %v1353_v29, %v1349_v48  ;;  %v3889_v57 = vadd.f32 -1e+08, %v1269_v54  ;;  %v1464_v58 = vrot.slane %v1269_v54, %v5146_v53  ;;  %v1272_v59 = vpop.xlane.xlu0 %1271  ;;  %v4775_v48 = vld [vmem:[%s5694_s22 + $0x8] sm:$0xff]  ;;  %v1753_v29 = vld [vmem:[%s5667_s8 + $0x10] sm:$0xff] }
 0x427   :  { %v3890_v60 = vadd.f32 -1e+08, %v1272_v59  ;;  %v1393_v0 = vsel %vm1380_vm3, %v1357_v50, %v1392_v55  ;;  %v1468_v63 = vrot.slane %v1272_v59, %v5146_v53  ;;  %v4647_v54 = vpack.c.bf16 %v1754_v8, %v1753_v29  ;;  %v2063_v59 = vld [vmem:[%s5668_s10 + $0x8] sm:$0xff] }
 0x428   :  { %v1361_v15 = vrot.slane %v3889_v57, %v5146_v53  ;;  %v1490_v3 = vsel %vm1382_vm4, %v1464_v58, %v1489_v61  ;;  %v2062_v58 = vld [vmem:[%s5668_s10] sm:$0xff] }
 0x429   :  { %v1365_v62 = vrot.slane %v3890_v60, %v5146_v53  ;;  %v1275_v1 = vpop.xlane.xlu1 %1274  ;;  %v1491_v12 = vsel %vm1384_vm5, %v1468_v63, %v1490_v3  ;;  %v4651_v60 = vpack.c.bf16 %v2063_v59, %v2062_v58  ;;  %v2067_v63 = vld [vmem:[%s5668_s10 + $0x28] sm:$0xff] }
 0x42a   :  { %v1394_v2 = vsel %vm1382_vm4, %v1361_v15, %v1393_v0  ;;  %v3891_v4 = vadd.f32 -1e+08, %v1275_v1  ;;  %v1472_v5 = vrot.slane %v1275_v1, %v5146_v53  ;;  %v1278_v6 = vpop.xlane.xlu0 %1277  ;;  %v2064_v15 = vld [vmem:[%s5668_s10 + $0x10] sm:$0xff]  ;;  %v2065_v0 = vld [vmem:[%s5668_s10 + $0x18] sm:$0xff]  ;;  %v2294_v3 = vld [vmem:[%s5669_s11 + $0x8] sm:$0xff] }
 0x42b   :  { %v3892_v7 = vadd.f32 -1e+08, %v1278_v6  ;;  %v1395_v11 = vsel %vm1384_vm5, %v1365_v62, %v1394_v2  ;;  %v1476_v14 = vrot.slane %v1278_v6, %v5146_v53  ;;  %v4655_v61 = vpack.c.bf16 %v2065_v0, %v2064_v15  ;;  %v2066_v62 = vld [vmem:[%s5668_s10 + $0x20] sm:$0xff] }
 0x42c   :  { %v1369_v10 = vrot.slane %v3891_v4, %v5146_v53  ;;  %v1492_v19 = vsel %vm1386_vm6, %v1472_v5, %v1491_v12  ;;  %v4659_v1 = vpack.c.bf16 %v2067_v63, %v2066_v62  ;;  %v2293_v2 = vld [vmem:[%s5669_s11] sm:$0xff] }
 0x42d   :  { %v1373_v13 = vrot.slane %v3892_v7, %v5146_v53  ;;  %v1281_v17 = vpop.xlane.xlu1 %1280  ;;  %v1493_v26 = vsel %vm1388_vm7, %v1476_v14, %v1492_v19  ;;  %v4663_v4 = vpack.c.bf16 %v2294_v3, %v2293_v2 }
 0x42e   :  { %v3893_v21 = vadd.f32 -1e+08, %v1281_v17  ;;  %v1480_v22 = vrot.slane %v1281_v17, %v5146_v53  ;;  %v1396_v23 = vsel %vm1386_vm6, %v1369_v10, %v1395_v11  ;;  %v3900_v11 = vld [vmem:[%s5670_s9] ss:$0 sm:$0xff] }
 0x42f   :  { %v1397_v25 = vsel %vm1388_vm7, %v1373_v13, %v1396_v23 }
 0x430   :  { %v1377_v24 = vrot.slane %v3893_v21, %v5146_v53  ;;  %v1494_v28 = vsel %vm1390_vm8, %v1480_v22, %v1493_v26 }
 0x432   :  { %v1398_v27 = vsel %vm1390_vm8, %v1377_v24, %v1397_v25 }
 0x433   :  { %v1498_v30 = vsel %vm76_vm9, %v1398_v27, %v1494_v28 }
 0x434   :  { %v1503_v31 = vsel %vm1499_vm10, %v1498_v30, -inf }
 0x435   :  { %1504 = vmax.xlane.f32.xlu1 %v1503_v31 }
 0x477   :  { %v4363_v33 = vpop.f32.mrb[28].mxu0 }
 0x478   :  { %v1596_v34 = vpop.f32.mrb[29].mxu0  ;;  %4370 = vmatpush3.msra.mxu0 %v4363_v33 }
 0x479   :  { %4365 = vmatpush3.msra.mxu1 %v1596_v34  ;;  %4652 = vmatprep.subr.bf16.mxu0 %v4651_v60 }
 0x47a   :  { %4644 = vmatprep.subr.bf16.mxu1 %v4643_v46 }
 0x4b2   :  { %v1502_v20 = vpop.xlane.xlu0 %1501 }
 0x4b3   :  { %v1506_v35 = vsub.f32 %v1497_v47, %v1502_v20  ;;  %v4774_v47 = vld [vmem:[%s5694_s22] sm:$0xff] }
 0x4b5   :  { %v1508_v36 = vmul.f32 1.442695, %v1506_v35 }
 0x4b7   :  { %4758 = vpow2.f32 %v1508_v36 }
 0x4c1   :  { %v4759_v37 = vpop.eup %4758 }
 0x4c2   :  { %v1505_v38 = vpop.xlane.xlu1 %1504  ;;  %v1512_v39 = vsel %vm1499_vm10, %v4759_v37, 0.0 }
 0x4c3   :  { %v1507_v40 = vsub.f32 %v1498_v30, %v1505_v38  ;;  %1513 = vadd.xlane.f32.xlu0 %v1512_v39 }
 0x4c5   :  { %v1510_v41 = vmul.f32 1.442695, %v1507_v40 }
 0x4c7   :  { %4760 = vpow2.f32 %v1510_v41 }
 0x4d1   :  { %v4761_v42 = vpop.eup %4760 }
 0x4d2   :  { %v1515_v43 = vsel %vm1499_vm10, %v4761_v42, 0.0 }
 0x4d3   :  { %1516 = vadd.xlane.f32.xlu1 %v1515_v43 }
 0x4d9   :  { %1841 = vrot.lane.b32.xlu0 %v4774_v47, %s4779_s5 }
 0x4e4   :  { %1843 = vrot.lane.b32.xlu1 %v4775_v48, %s4779_s5 }
 0x550   :  { %v1514_v49 = vpop.xlane.xlu0 %1513 }
 0x551   :  { %4762 = vrcp.f32 %v1514_v49 }
 0x554   :  { %v1842_v13 = vpop.permute.xlu0 %1841 }
 0x55b   :  { %v4763_v50 = vpop.eup %4762 }
 0x55c   :  { %v1520_v52 = vmul.f32 %v4763_v50, %v4759_v37 }
 0x55e   :  { %4367 = vmatmul.mubr.msk.f32.vlgmr.msra.gmra.mrb[36].mxu1 %vm1499_vm10, %v1520_v52 }
 0x55f   :  { %4646 = vmatpush3.bf16.msra.mxu1 %v4643_v46  ;;  %4382 = vmatprep.mubr.msk.f32.mxu1 %vm293_vm0, %v4774_v47 }
 0x560   :  { %v1517_v55 = vpop.xlane.xlu1 %1516  ;;  %4648 = vmatprep.subr.bf16.mxu1 %v4647_v54 }
 0x561   :  { %4764 = vrcp.f32 %v1517_v55 }
 0x563   :  { %4650 = vmatpush3.bf16.msra.mxu1 %v4647_v54 }
 0x564   :  { %4664 = vmatprep.subr.bf16.mxu1 %v4663_v4  ;;  %v1844_v28 = vpop.permute.xlu1 %1843 }
 0x566   :  { %4383 = vmatmul.mubr.msk.f32.vlgmr.msra.gmra.mrb[38].mxu1 %vm293_vm0, %v4775_v48 }
 0x567   :  { %4666 = vmatpush3.bf16.msra.mxu1 %v4663_v4 }
 0x56b   :  { %v4765_v56 = vpop.eup %4764 }
 0x56c   :  { %v1521_v57 = vmul.f32 %v4765_v56, %v4761_v42 }
 0x56e   :  { %4372 = vmatmul.mubr.msk.f32.vlgmr.msra.gmra.mrb[30].mxu0 %vm1499_vm10, %v1521_v57 }
 0x56f   :  { %4654 = vmatpush3.bf16.msra.mxu0 %v4651_v60 }
 0x570   :  { %4656 = vmatprep.subr.bf16.mxu0 %v4655_v61 }
 0x573   :  { %4658 = vmatpush3.bf16.msra.mxu0 %v4655_v61 }
 0x574   :  { %4660 = vmatprep.subr.bf16.mxu0 %v4659_v1 }
 0x577   :  { %4662 = vmatpush3.bf16.msra.mxu0 %v4659_v1 }
 0x631   :  { %v1674_v5 = vpop.f32.mrb[36].mxu1 }
 0x632   :  { %v4368_v6 = vpop.f32.mrb[37].mxu1 }
 0x639   :  { %v4384_v7 = vpop.f32.mrb[38].mxu1 }
 0x63a   :  { %v1821_v10 = vpop.f32.mrb[39].mxu1 }
 0x63b   :  { %v1830_v12 = vadd.f32 %v1821_v10, %v1674_v5 }
 0x63d   :  { %v1839_v14 = vadd.f32 %v3900_v11, %v1830_v12 }
 0x63f   :  { %v5278_v17 = vsel %vm1847_vm12, %v1839_v14, %v1842_v13 }
 0x640   :  { %v1859_v19 = vrot.slane %v5278_v17, %v4925_v16  ;;  %v1852_v21 = vcombine.high %v5278_v17, %v5278_v17 }
 0x641   :  { %v1747_v22 = vpop.f32.mrb[30].mxu0 }
 0x642   :  { %v1831_v23 = vadd.f32 %v4384_v7, %v1747_v22  ;;  %v4373_v24 = vpop.f32.mrb[31].mxu0  ;;  %v1867_v25 = vcombine.high %v1859_v19, %v1859_v19  ;;  %v1875_v26 = vrot.slane %v1859_v19, %v4925_v16  ;;  %v1866_v27 = vrot.slane %v1852_v21, %v4925_v16 }
 0x644   :  { %v1840_v30 = vadd.f32 %v3900_v11, %v1831_v23  ;;  %v1953_v31 = vrot.slane %v1875_v26, %v4930_v18  ;;  %v1889_v33 = vrot.slane %v1867_v25, %v4925_v16  ;;  %v1897_v34 = vcombine.high %v1875_v26, %v1875_v26 }
 0x645   :  { %v1882_v20 = vrot.slane %v1866_v27, %v4925_v16  ;;  %v1868_v35 = vcombine.high %v1866_v27, %v1866_v27 }
 0x646   :  { %v5290_v36 = vsel %vm1847_vm12, %v1840_v30, %v1844_v28  ;;  %v2030_v37 = vsub.f32 %v1953_v31, %v5278_v17  ;;  %v1957_v38 = vrot.slane %v1889_v33, %v4930_v18  ;;  %v1961_v39 = vrot.slane %v1897_v34, %v4930_v18 }
 0x647   :  { %v1899_v40 = vcombine.high %v1889_v33, %v1889_v33  ;;  %v1969_v41 = vrot.slane %v1882_v20, %v4930_v18  ;;  %v1896_v42 = vrot.slane %v1868_v35, %v4925_v16  ;;  %v1898_v43 = vcombine.high %v1882_v20, %v1882_v20 }
 0x648   :  { %v2046_v44 = vand.u32 2147483647, %v2030_v37  ;;  %v2031_v45 = vsub.f32 %v1957_v38, %v5278_v17  ;;  %v2032_v46 = vsub.f32 %v1961_v39, %v5278_v17  ;;  %v1908_v47 = vrot.slane %v5290_v36, %v4925_v16 }
 0x649   :  { %v1965_v48 = vrot.slane %v1899_v40, %v4930_v18  ;;  %v1973_v49 = vrot.slane %v1896_v42, %v4930_v18  ;;  %v2034_v50 = vsub.f32 %v1969_v41, %v5278_v17  ;;  %v1900_v52 = vcombine.high %v1896_v42, %v1896_v42 }
 0x64a   :  { %4397 = vmatprep.mubr.msk.f32.mxu0 %vm754_vm1, %v2046_v44  ;;  %v2047_v29 = vand.u32 2147483647, %v2031_v45  ;;  %v2048_v8 = vand.u32 2147483647, %v2032_v46  ;;  %v1977_v55 = vrot.slane %v1898_v43, %v4930_v18  ;;  %v1924_v56 = vrot.slane %v1908_v47, %v4925_v16  ;;  %v2296_v44 = vld [vmem:[%s5669_s11 + $0x18] sm:$0xff]  ;;  %v2522_v46 = vld [vmem:[%s5671_s12] sm:$0xff] }
 0x64b   :  { %v2033_v54 = vsub.f32 %v1965_v48, %v5278_v17  ;;  %v1916_v57 = vcombine.high %v1908_v47, %v1908_v47  ;;  %v2035_v58 = vsub.f32 %v1973_v49, %v5278_v17  ;;  %v1901_v59 = vcombine.high %v5290_v36, %v5290_v36  ;;  %v2523_v47 = vld [vmem:[%s5671_s12 + $0x8] sm:$0xff]  ;;  %v2524_v48 = vld [vmem:[%s5671_s12 + $0x10] sm:$0xff] }
 0x64c   :  { %4398 = vmatmul.mubr.msk.f32.vlgmr.msra.gmra.mrb[32].mxu0 %vm754_vm1, %v2047_v29  ;;  %v2050_v15 = vand.u32 2147483647, %v2034_v50  ;;  %v1981_v0 = vrot.slane %v1900_v52, %v4930_v18  ;;  %v2036_v62 = vsub.f32 %v1977_v55, %v5278_v17  ;;  %v1985_v63 = vrot.slane %v1924_v56, %v4930_v18  ;;  %v2525_v29 = vld [vmem:[%s5671_s12 + $0x18] sm:$0xff]  ;;  %v2526_v50 = vld [vmem:[%s5671_s12 + $0x20] sm:$0xff]  ;;  %v2527_v52 = vld [vmem:[%s5671_s12 + $0x28] sm:$0xff] }
 0x64d   :  { %4400 = vmatprep.mubr.msk.f32.mxu0 %vm754_vm1, %v2048_v8  ;;  %v2049_v60 = vand.u32 2147483647, %v2033_v54  ;;  %v1938_v61 = vrot.slane %v1916_v57, %v4925_v16  ;;  %v1946_v1 = vcombine.high %v1924_v56, %v1924_v56  ;;  %v1915_v2 = vrot.slane %v1901_v59, %v4925_v16 }
 0x64e   :  { %v2051_v3 = vand.u32 2147483647, %v2035_v58  ;;  %v2037_v4 = vsub.f32 %v1981_v0, %v5278_v17  ;;  %v2052_v10 = vand.u32 2147483647, %v2036_v62  ;;  %v2038_v11 = vsub.f32 %v1985_v63, %v5290_v36 }
 0x64f   :  { %v1989_v5 = vrot.slane %v1938_v61, %v4930_v18  ;;  %v1948_v6 = vcombine.high %v1938_v61, %v1938_v61  ;;  %v1917_v7 = vcombine.high %v1915_v2, %v1915_v2  ;;  %v1993_v12 = vrot.slane %v1946_v1, %v4930_v18 }
 0x650   :  { %4401 = vmatmul.mubr.msk.f32.gmra.mrb[34].mxu0 %vm754_vm1, %v2049_v60  ;;  %v1931_v13 = vrot.slane %v1915_v2, %v4925_v16  ;;  %v2053_v14 = vand.u32 2147483647, %v2037_v4  ;;  %v2054_v23 = vand.u32 2147483647, %v2038_v11  ;;  %v4671_v49 = vpack.c.bf16 %v2523_v47, %v2522_v46  ;;  %v3288_v46 = vld [vmem:[%s5672_s15 + $0x8] sm:$0xff] }
 0x651   :  { %4403 = vmatprep.mubr.msk.f32.mxu0 %vm754_vm1, %v2050_v15  ;;  %v2039_v19 = vsub.f32 %v1989_v5, %v5290_v36  ;;  %v1997_v21 = vrot.slane %v1948_v6, %v4930_v18  ;;  %v1945_v22 = vrot.slane %v1917_v7, %v4925_v16  ;;  %v2040_v24 = vsub.f32 %v1993_v12, %v5290_v36 }
 0x652   :  { %v2001_v25 = vrot.slane %v1931_v13, %v4930_v18  ;;  %v1947_v26 = vcombine.high %v1931_v13, %v1931_v13  ;;  %v4675_v8 = vpack.c.bf16 %v2525_v29, %v2524_v48  ;;  %4672 = vmatprep.subr.bf16.mxu0 %v4671_v49  ;;  %v4679_v54 = vpack.c.bf16 %v2527_v52, %v2526_v50  ;;  %v2753_v48 = vld [vmem:[%s5673_s13] sm:$0xff]  ;;  %v2755_v29 = vld [vmem:[%s5673_s13 + $0x10] sm:$0xff]  ;;  %v2756_v50 = vld [vmem:[%s5673_s13 + $0x18] sm:$0xff] }
 0x653   :  { %v2055_v27 = vand.u32 2147483647, %v2039_v19  ;;  %v2041_v28 = vsub.f32 %v1997_v21, %v5290_v36  ;;  %v2005_v30 = vrot.slane %v1945_v22, %v4930_v18  ;;  %v1949_v31 = vcombine.high %v1945_v22, %v1945_v22  ;;  %4674 = vmatpush3.bf16.msra.mxu0 %v4671_v49  ;;  %v2754_v49 = vld [vmem:[%s5673_s13 + $0x8] sm:$0xff] }
 0x654   :  { %4404 = vmatmul.mubr.msk.f32.gmra.mrb[36].mxu0 %vm754_vm1, %v2051_v3  ;;  %v2056_v33 = vand.u32 2147483647, %v2040_v24  ;;  %v2042_v34 = vsub.f32 %v2001_v25, %v5290_v36  ;;  %v2009_v16 = vrot.slane %v1947_v26, %v4930_v18  ;;  %4676 = vmatprep.subr.bf16.mxu0 %v4675_v8  ;;  %v4687_v52 = vpack.c.bf16 %v2756_v50, %v2755_v29 }
 0x655   :  { %4406 = vmatprep.mubr.msk.f32.mxu0 %vm754_vm1, %v2052_v10  ;;  %v2057_v20 = vand.u32 2147483647, %v2041_v28  ;;  %v2043_v35 = vsub.f32 %v2005_v30, %v5290_v36  ;;  %v2013_v37 = vrot.slane %v1949_v31, %v4930_v18  ;;  %v2295_v18 = vld [vmem:[%s5669_s11 + $0x10] sm:$0xff] }
 0x656   :  { %v2058_v38 = vand.u32 2147483647, %v2042_v34  ;;  %v2044_v39 = vsub.f32 %v2009_v16, %v5290_v36  ;;  %v4667_v45 = vpack.c.bf16 %v2296_v44, %v2295_v18 }
 0x657   :  { %v2059_v40 = vand.u32 2147483647, %v2043_v35  ;;  %v2045_v41 = vsub.f32 %v2013_v37, %v5290_v36  ;;  %4678 = vmatpush3.bf16.msra.mxu0 %v4675_v8  ;;  %v4683_v8 = vpack.c.bf16 %v2754_v49, %v2753_v48 }
 0x658   :  { %4407 = vmatmul.mubr.msk.f32.gmra.mrb[38].mxu0 %vm754_vm1, %v2053_v14  ;;  %v2060_v42 = vand.u32 2147483647, %v2044_v39  ;;  %4668 = vmatprep.subr.bf16.mxu1 %v4667_v45 }
 0x659   :  { %4409 = vmatprep.mubr.msk.f32.mxu0 %vm754_vm1, %v2054_v23  ;;  %v2061_v43 = vand.u32 2147483647, %v2045_v41  ;;  %4670 = vmatpush3.bf16.msra.mxu1 %v4667_v45  ;;  %v3287_v45 = vld [vmem:[%s5672_s15] sm:$0xff] }
 0x65a   :  { %4680 = vmatprep.subr.bf16.mxu0 %v4679_v54  ;;  %v4695_v47 = vpack.c.bf16 %v3288_v46, %v3287_v45  ;;  %4684 = vmatprep.subr.bf16.mxu1 %v4683_v8 }
 0x65b   :  { %4682 = vmatpush3.bf16.msra.mxu0 %v4679_v54  ;;  %v2757_v54 = vld [vmem:[%s5673_s13 + $0x20] sm:$0xff] }
 0x65c   :  { %4410 = vmatmul.mubr.msk.f32.gmra.mrb[40].mxu0 %vm754_vm1, %v2055_v27  ;;  %4696 = vmatprep.subr.bf16.mxu0 %v4695_v47 }
 0x65d   :  { %4412 = vmatprep.mubr.msk.f32.mxu0 %vm754_vm1, %v2056_v33 }
 0x660   :  { %4413 = vmatmul.mubr.msk.f32.gmra.mrb[42].mxu0 %vm754_vm1, %v2057_v20 }
 0x661   :  { %4415 = vmatprep.mubr.msk.f32.mxu0 %vm754_vm1, %v2058_v38 }
 0x664   :  { %4416 = vmatmul.mubr.msk.f32.gmra.mrb[44].mxu0 %vm754_vm1, %v2059_v40 }
 0x665   :  { %4418 = vmatprep.mubr.msk.f32.mxu0 %vm754_vm1, %v2060_v42 }
 0x668   :  { %4419 = vmatmul.mubr.msk.f32.gmra.mrb[46].mxu0 %vm754_vm1, %v2061_v43 }
 0x71f   :  { %v4399_v55 = vpop.f32.mrb[32].mxu0 }
 0x720   :  { %v2262_v56 = vmul.f32 0.2, %v4399_v55  ;;  %v2182_v57 = vpop.f32.mrb[33].mxu0 }
 0x721   :  { %v2261_v58 = vmul.f32 0.2, %v2182_v57 }
 0x722   :  { %v2278_v15 = vmax.f32 %v4399_v55, %v2262_v56  ;;  %v2758_v55 = vld [vmem:[%s5673_s13 + $0x28] sm:$0xff] }
 0x723   :  { %v2277_v59 = vmax.f32 %v2182_v57, %v2261_v58  ;;  %v4402_v60 = vpop.f32.mrb[34].mxu0  ;;  %v4691_v56 = vpack.c.bf16 %v2758_v55, %v2757_v54 }
 0x724   :  { %v2264_v0 = vmul.f32 0.2, %v4402_v60  ;;  %v2192_v61 = vpop.f32.mrb[35].mxu0 }
 0x725   :  { %v2263_v62 = vmul.f32 0.2, %v2192_v61  ;;  %4429 = vmatprep.mubr.msk.f32.mxu1 %vm293_vm0, %v2277_v59 }
 0x726   :  { %4430 = vmatmul.mubr.msk.f32.vlgmr.msra.gmra.mrb[40].mxu1 %vm293_vm0, %v2278_v15  ;;  %v2280_v2 = vmax.f32 %v4402_v60, %v2264_v0  ;;  %v3289_v15 = vld [vmem:[%s5672_s15 + $0x10] sm:$0xff]  ;;  %v3290_v0 = vld [vmem:[%s5672_s15 + $0x18] sm:$0xff] }
 0x727   :  { %v2279_v63 = vmax.f32 %v2192_v61, %v2263_v62  ;;  %v4405_v1 = vpop.f32.mrb[36].mxu0  ;;  %4686 = vmatpush3.bf16.msra.mxu1 %v4683_v8 }
 0x728   :  { %v2266_v3 = vmul.f32 0.2, %v4405_v1  ;;  %v2202_v4 = vpop.f32.mrb[37].mxu0  ;;  %4688 = vmatprep.subr.bf16.mxu1 %v4687_v52 }
 0x729   :  { %v2265_v5 = vmul.f32 0.2, %v2202_v4  ;;  %4432 = vmatprep.mubr.msk.f32.mxu1 %vm293_vm0, %v2279_v63 }
 0x72a   :  { %4433 = vmatmul.mubr.msk.f32.gmra.mrb[42].mxu1 %vm293_vm0, %v2280_v2  ;;  %v2282_v10 = vmax.f32 %v4405_v1, %v2266_v3  ;;  %v4699_v3 = vpack.c.bf16 %v3290_v0, %v3289_v15 }
 0x72b   :  { %v2281_v6 = vmax.f32 %v2202_v4, %v2265_v5  ;;  %v4408_v7 = vpop.f32.mrb[38].mxu0  ;;  %4690 = vmatpush3.bf16.msra.mxu1 %v4687_v52  ;;  %v3291_v5 = vld [vmem:[%s5672_s15 + $0x20] sm:$0xff] }
 0x72c   :  { %v2268_v11 = vmul.f32 0.2, %v4408_v7  ;;  %v2212_v12 = vpop.f32.mrb[39].mxu0  ;;  %4692 = vmatprep.subr.bf16.mxu1 %v4691_v56 }
 0x72d   :  { %v2267_v13 = vmul.f32 0.2, %v2212_v12  ;;  %4435 = vmatprep.mubr.msk.f32.mxu1 %vm293_vm0, %v2281_v6  ;;  %v3292_v6 = vld [vmem:[%s5672_s15 + $0x28] sm:$0xff] }
 0x72e   :  { %4436 = vmatmul.mubr.msk.f32.gmra.mrb[44].mxu1 %vm293_vm0, %v2282_v10  ;;  %v2284_v21 = vmax.f32 %v4408_v7, %v2268_v11 }
 0x72f   :  { %v2283_v14 = vmax.f32 %v2212_v12, %v2267_v13  ;;  %v4411_v19 = vpop.f32.mrb[40].mxu0  ;;  %4694 = vmatpush3.bf16.msra.mxu1 %v4691_v56 }
 0x730   :  { %v2270_v22 = vmul.f32 0.2, %v4411_v19  ;;  %v2222_v23 = vpop.f32.mrb[41].mxu0  ;;  %4540 = vmatprep.subr.mxu1 %v4777_v32 }
 0x731   :  { %v2269_v24 = vmul.f32 0.2, %v2222_v23  ;;  %4438 = vmatprep.mubr.msk.f32.mxu1 %vm293_vm0, %v2283_v14  ;;  %v4703_v14 = vpack.c.bf16 %v3292_v6, %v3291_v5 }
 0x732   :  { %4439 = vmatmul.mubr.msk.f32.gmra.mrb[46].mxu1 %vm293_vm0, %v2284_v21  ;;  %v2286_v27 = vmax.f32 %v4411_v19, %v2270_v22 }
 0x733   :  { %v2285_v25 = vmax.f32 %v2222_v23, %v2269_v24  ;;  %v4414_v26 = vpop.f32.mrb[42].mxu0 }
 0x734   :  { %v2272_v28 = vmul.f32 0.2, %v4414_v26  ;;  %v2232_v30 = vpop.f32.mrb[43].mxu0 }
 0x735   :  { %v2271_v31 = vmul.f32 0.2, %v2232_v30  ;;  %4441 = vmatprep.mubr.msk.f32.mxu1 %vm293_vm0, %v2285_v25 }
 0x736   :  { %4442 = vmatmul.mubr.msk.f32.gmra.mrb[48].mxu1 %vm293_vm0, %v2286_v27  ;;  %v2288_v16 = vmax.f32 %v4414_v26, %v2272_v28 }
 0x737   :  { %v2287_v33 = vmax.f32 %v2232_v30, %v2271_v31  ;;  %v4417_v34 = vpop.f32.mrb[44].mxu0 }
 0x738   :  { %v2274_v20 = vmul.f32 0.2, %v4417_v34  ;;  %v2242_v35 = vpop.f32.mrb[45].mxu0 }
 0x739   :  { %v2273_v37 = vmul.f32 0.2, %v2242_v35  ;;  %4444 = vmatprep.mubr.msk.f32.mxu1 %vm293_vm0, %v2287_v33 }
 0x73a   :  { %4445 = vmatmul.mubr.msk.f32.gmra.mrb[50].mxu1 %vm293_vm0, %v2288_v16  ;;  %v2290_v40 = vmax.f32 %v4417_v34, %v2274_v20 }
 0x73b   :  { %v2289_v38 = vmax.f32 %v2242_v35, %v2273_v37  ;;  %v4420_v39 = vpop.f32.mrb[46].mxu0 }
 0x73c   :  { %v2276_v41 = vmul.f32 0.2, %v4420_v39  ;;  %v2252_v42 = vpop.f32.mrb[47].mxu0 }
 0x73d   :  { %v2275_v43 = vmul.f32 0.2, %v2252_v42  ;;  %4447 = vmatprep.mubr.msk.f32.mxu1 %vm293_vm0, %v2289_v38 }
 0x73e   :  { %4448 = vmatmul.mubr.msk.f32.gmra.mrb[52].mxu1 %vm293_vm0, %v2290_v40  ;;  %v2292_v44 = vmax.f32 %v4420_v39, %v2276_v41 }
 0x73f   :  { %v2291_v18 = vmax.f32 %v2252_v42, %v2275_v43 }
 0x741   :  { %4450 = vmatprep.mubr.msk.f32.mxu1 %vm293_vm0, %v2291_v18 }
 0x742   :  { %4451 = vmatmul.mubr.msk.f32.gmra.mrb[54].mxu1 %vm293_vm0, %v2292_v44 }
 0x7f9   :  { %v4431_v57 = vpop.f32.mrb[40].mxu1 }
 0x7fa   :  { %v2491_v58 = vmul.f32 0.2, %v4431_v57  ;;  %v2411_v59 = vpop.f32.mrb[41].mxu1 }
 0x7fb   :  { %v2490_v60 = vmul.f32 0.2, %v2411_v59 }
 0x7fc   :  { %v2507_v63 = vmax.f32 %v4431_v57, %v2491_v58 }
 0x7fd   :  { %v2506_v61 = vmax.f32 %v2411_v59, %v2490_v60  ;;  %v4434_v62 = vpop.f32.mrb[42].mxu1 }
 0x7fe   :  { %v2493_v1 = vmul.f32 0.2, %v4434_v62  ;;  %v2421_v2 = vpop.f32.mrb[43].mxu1 }
 0x7ff   :  { %v2492_v4 = vmul.f32 0.2, %v2421_v2  ;;  %4465 = vmatprep.mubr.msk.f32.mxu0 %vm754_vm1, %v2506_v61 }
 0x800   :  { %4466 = vmatmul.mubr.msk.f32.vlgmr.msra.gmra.mrb[48].mxu0 %vm754_vm1, %v2507_v63  ;;  %v2509_v11 = vmax.f32 %v4434_v62, %v2493_v1 }
 0x801   :  { %v2508_v7 = vmax.f32 %v2421_v2, %v2492_v4  ;;  %v4437_v10 = vpop.f32.mrb[44].mxu1  ;;  %4698 = vmatpush3.bf16.msra.mxu0 %v4695_v47 }
 0x802   :  { %v2495_v12 = vmul.f32 0.2, %v4437_v10  ;;  %v2431_v13 = vpop.f32.mrb[45].mxu1  ;;  %4700 = vmatprep.subr.bf16.mxu0 %v4699_v3 }
 0x803   :  { %v2494_v19 = vmul.f32 0.2, %v2431_v13  ;;  %4468 = vmatprep.mubr.msk.f32.mxu0 %vm754_vm1, %v2508_v7 }
 0x804   :  { %4469 = vmatmul.mubr.msk.f32.gmra.mrb[50].mxu0 %vm754_vm1, %v2509_v11  ;;  %v2511_v23 = vmax.f32 %v4437_v10, %v2495_v12 }
 0x805   :  { %v2510_v21 = vmax.f32 %v2431_v13, %v2494_v19  ;;  %v4440_v22 = vpop.f32.mrb[46].mxu1  ;;  %4702 = vmatpush3.bf16.msra.mxu0 %v4699_v3 }
 0x806   :  { %v2497_v24 = vmul.f32 0.2, %v4440_v22  ;;  %v2441_v25 = vpop.f32.mrb[47].mxu1  ;;  %4704 = vmatprep.subr.bf16.mxu0 %v4703_v14 }
 0x807   :  { %v2496_v26 = vmul.f32 0.2, %v2441_v25  ;;  %4471 = vmatprep.mubr.msk.f32.mxu0 %vm754_vm1, %v2510_v21 }
 0x808   :  { %4472 = vmatmul.mubr.msk.f32.gmra.mrb[52].mxu0 %vm754_vm1, %v2511_v23  ;;  %v2513_v30 = vmax.f32 %v4440_v22, %v2497_v24 }
 0x809   :  { %v2512_v27 = vmax.f32 %v2441_v25, %v2496_v26  ;;  %v4443_v28 = vpop.f32.mrb[48].mxu1  ;;  %4706 = vmatpush3.bf16.msra.mxu0 %v4703_v14 }
 0x80a   :  { %v2499_v31 = vmul.f32 0.2, %v4443_v28  ;;  %v2451_v33 = vpop.f32.mrb[49].mxu1  ;;  %4545 = vmatprep.subr.mxu0 %v4777_v32 }
 0x80b   :  { %v2498_v34 = vmul.f32 0.2, %v2451_v33  ;;  %4474 = vmatprep.mubr.msk.f32.mxu0 %vm754_vm1, %v2512_v27 }
 0x80c   :  { %4475 = vmatmul.mubr.msk.f32.gmra.mrb[54].mxu0 %vm754_vm1, %v2513_v30  ;;  %v2515_v35 = vmax.f32 %v4443_v28, %v2499_v31 }
 0x80d   :  { %v2514_v16 = vmax.f32 %v2451_v33, %v2498_v34  ;;  %v4446_v20 = vpop.f32.mrb[50].mxu1 }
 0x80e   :  { %v2501_v37 = vmul.f32 0.2, %v4446_v20  ;;  %v2461_v38 = vpop.f32.mrb[51].mxu1 }
 0x80f   :  { %v2500_v39 = vmul.f32 0.2, %v2461_v38  ;;  %4477 = vmatprep.mubr.msk.f32.mxu0 %vm754_vm1, %v2514_v16 }
 0x810   :  { %4478 = vmatmul.mubr.msk.f32.gmra.mrb[56].mxu0 %vm754_vm1, %v2515_v35  ;;  %v2517_v42 = vmax.f32 %v4446_v20, %v2501_v37 }
 0x811   :  { %v2516_v40 = vmax.f32 %v2461_v38, %v2500_v39  ;;  %v4449_v41 = vpop.f32.mrb[52].mxu1 }
 0x812   :  { %v2503_v43 = vmul.f32 0.2, %v4449_v41  ;;  %v2471_v18 = vpop.f32.mrb[53].mxu1 }
 0x813   :  { %v2502_v44 = vmul.f32 0.2, %v2471_v18  ;;  %4480 = vmatprep.mubr.msk.f32.mxu0 %vm754_vm1, %v2516_v40 }
 0x814   :  { %4481 = vmatmul.mubr.msk.f32.gmra.mrb[58].mxu0 %vm754_vm1, %v2517_v42  ;;  %v2519_v47 = vmax.f32 %v4449_v41, %v2503_v43 }
 0x815   :  { %v2518_v45 = vmax.f32 %v2471_v18, %v2502_v44  ;;  %v4452_v46 = vpop.f32.mrb[54].mxu1 }
 0x816   :  { %v2505_v48 = vmul.f32 0.2, %v4452_v46  ;;  %v2481_v49 = vpop.f32.mrb[55].mxu1 }
 0x817   :  { %v2504_v29 = vmul.f32 0.2, %v2481_v49  ;;  %4483 = vmatprep.mubr.msk.f32.mxu0 %vm754_vm1, %v2518_v45 }
 0x818   :  { %4484 = vmatmul.mubr.msk.f32.gmra.mrb[60].mxu0 %vm754_vm1, %v2519_v47  ;;  %v2521_v50 = vmax.f32 %v4452_v46, %v2505_v48 }
 0x819   :  { %v2520_v8 = vmax.f32 %v2481_v49, %v2504_v29  ;;  %v5470_v49 = vld [vmem:[%s5674_s14] ss:$0 sm:$0xff] }
 0x81b   :  { %4486 = vmatprep.mubr.msk.f32.mxu0 %vm754_vm1, %v2520_v8 }
 0x81c   :  { %4487 = vmatmul.mubr.msk.f32.gmra.mrb[62].mxu0 %vm754_vm1, %v2521_v50 }
 0x81d   :  { %4537 = vmatprep.mubr.msk.f32.mxu0 %vm754_vm1, %v5278_v17 }
 0x820   :  { %4538 = vmatmul.mubr.msk.f32.vlgmr.msra.gmra.mrb[64].mxu0 %vm754_vm1, %v5290_v36 }
 0x821   :  { %4547 = vmatprep.mubr.msk.f32.mxu0 %vm4778_vm11, %v4777_v32 }
 0x8d3   :  { %v4467_v52 = vpop.f32.mrb[48].mxu0 }
 0x8d4   :  { %v2722_v54 = vmul.f32 0.2, %v4467_v52  ;;  %v2642_v55 = vpop.f32.mrb[49].mxu0 }
 0x8d5   :  { %v2721_v56 = vmul.f32 0.2, %v2642_v55 }
 0x8d6   :  { %v2738_v59 = vmax.f32 %v4467_v52, %v2722_v54 }
 0x8d7   :  { %v2737_v57 = vmax.f32 %v2642_v55, %v2721_v56  ;;  %v4470_v58 = vpop.f32.mrb[50].mxu0 }
 0x8d8   :  { %v2724_v60 = vmul.f32 0.2, %v4470_v58  ;;  %v2652_v15 = vpop.f32.mrb[51].mxu0 }
 0x8d9   :  { %v2723_v0 = vmul.f32 0.2, %v2652_v15  ;;  %4501 = vmatprep.mubr.msk.f32.mxu1 %vm754_vm1, %v2737_v57 }
 0x8da   :  { %4502 = vmatmul.mubr.msk.f32.vlgmr.msra.gmra.mrb[56].mxu1 %vm754_vm1, %v2738_v59  ;;  %v2740_v63 = vmax.f32 %v4470_v58, %v2724_v60 }
 0x8db   :  { %v2739_v61 = vmax.f32 %v2652_v15, %v2723_v0  ;;  %v4473_v62 = vpop.f32.mrb[52].mxu0 }
 0x8dc   :  { %v2726_v1 = vmul.f32 0.2, %v4473_v62  ;;  %v2662_v2 = vpop.f32.mrb[53].mxu0 }
 0x8dd   :  { %v2725_v3 = vmul.f32 0.2, %v2662_v2  ;;  %4504 = vmatprep.mubr.msk.f32.mxu1 %vm754_vm1, %v2739_v61 }
 0x8de   :  { %4505 = vmatmul.mubr.msk.f32.gmra.mrb[58].mxu1 %vm754_vm1, %v2740_v63  ;;  %v2742_v6 = vmax.f32 %v4473_v62, %v2726_v1 }
 0x8df   :  { %v2741_v4 = vmax.f32 %v2662_v2, %v2725_v3  ;;  %v4476_v5 = vpop.f32.mrb[54].mxu0 }
 0x8e0   :  { %v2728_v7 = vmul.f32 0.2, %v4476_v5  ;;  %v2672_v10 = vpop.f32.mrb[55].mxu0 }
 0x8e1   :  { %v2727_v11 = vmul.f32 0.2, %v2672_v10  ;;  %4507 = vmatprep.mubr.msk.f32.mxu1 %vm754_vm1, %v2741_v4 }
 0x8e2   :  { %4508 = vmatmul.mubr.msk.f32.gmra.mrb[60].mxu1 %vm754_vm1, %v2742_v6  ;;  %v2744_v14 = vmax.f32 %v4476_v5, %v2728_v7 }
 0x8e3   :  { %v2743_v12 = vmax.f32 %v2672_v10, %v2727_v11  ;;  %v4479_v13 = vpop.f32.mrb[56].mxu0 }
 0x8e4   :  { %v2730_v19 = vmul.f32 0.2, %v4479_v13  ;;  %v2682_v21 = vpop.f32.mrb[57].mxu0 }
 0x8e5   :  { %v2729_v22 = vmul.f32 0.2, %v2682_v21  ;;  %4510 = vmatprep.mubr.msk.f32.mxu1 %vm754_vm1, %v2743_v12 }
 0x8e6   :  { %4511 = vmatmul.mubr.msk.f32.gmra.mrb[62].mxu1 %vm754_vm1, %v2744_v14  ;;  %v2746_v25 = vmax.f32 %v4479_v13, %v2730_v19 }
 0x8e7   :  { %v2745_v23 = vmax.f32 %v2682_v21, %v2729_v22  ;;  %v4482_v24 = vpop.f32.mrb[58].mxu0 }
 0x8e8   :  { %v2732_v26 = vmul.f32 0.2, %v4482_v24  ;;  %v2692_v27 = vpop.f32.mrb[59].mxu0 }
 0x8e9   :  { %v2731_v28 = vmul.f32 0.2, %v2692_v27  ;;  %4513 = vmatprep.mubr.msk.f32.mxu1 %vm754_vm1, %v2745_v23 }
 0x8ea   :  { %4514 = vmatmul.mubr.msk.f32.gmra.mrb[64].mxu1 %vm754_vm1, %v2746_v25  ;;  %v2748_v33 = vmax.f32 %v4482_v24, %v2732_v26 }
 0x8eb   :  { %v2747_v30 = vmax.f32 %v2692_v27, %v2731_v28  ;;  %v4485_v31 = vpop.f32.mrb[60].mxu0 }
 0x8ec   :  { %v2734_v34 = vmul.f32 0.2, %v4485_v31  ;;  %v2702_v16 = vpop.f32.mrb[61].mxu0 }
 0x8ed   :  { %v2733_v20 = vmul.f32 0.2, %v2702_v16  ;;  %4516 = vmatprep.mubr.msk.f32.mxu1 %vm754_vm1, %v2747_v30 }
 0x8ee   :  { %4517 = vmatmul.mubr.msk.f32.gmra.mrb[66].mxu1 %vm754_vm1, %v2748_v33  ;;  %v2750_v38 = vmax.f32 %v4485_v31, %v2734_v34 }
 0x8ef   :  { %v2749_v35 = vmax.f32 %v2702_v16, %v2733_v20  ;;  %v4488_v37 = vpop.f32.mrb[62].mxu0 }
 0x8f0   :  { %v2736_v39 = vmul.f32 0.2, %v4488_v37  ;;  %v2712_v40 = vpop.f32.mrb[63].mxu0 }
 0x8f1   :  { %v2735_v41 = vmul.f32 0.2, %v2712_v40  ;;  %4519 = vmatprep.mubr.msk.f32.mxu1 %vm754_vm1, %v2749_v35 }
 0x8f2   :  { %4520 = vmatmul.mubr.msk.f32.gmra.mrb[68].mxu1 %vm754_vm1, %v2750_v38  ;;  %v2752_v18 = vmax.f32 %v4488_v37, %v2736_v39 }
 0x8f3   :  { %v2751_v42 = vmax.f32 %v2712_v40, %v2735_v41  ;;  %v4539_v43 = vpop.f32.mrb[64].mxu0 }
 0x8f4   :  { %v3363_v44 = vpop.f32.mrb[65].mxu0  ;;  %4546 = vmatpush3.msra.mxu0 %v4539_v43 }
 0x8f5   :  { %4522 = vmatprep.mubr.msk.f32.mxu1 %vm754_vm1, %v2751_v42  ;;  %4541 = vmatpush3.msra.mxu1 %v3363_v44 }
 0x8f6   :  { %4523 = vmatmul.mubr.msk.f32.gmra.mrb[70].mxu1 %vm754_vm1, %v2752_v18 }
 0x8f7   :  { %4542 = vmatprep.mubr.msk.f32.mxu1 %vm4778_vm11, %v4777_v32 }
 0x9ad   :  { %v4503_v45 = vpop.f32.mrb[56].mxu1 }
 0x9ae   :  { %v2953_v46 = vmul.f32 0.2, %v4503_v45  ;;  %v2873_v47 = vpop.f32.mrb[57].mxu1 }
 0x9af   :  { %v2952_v48 = vmul.f32 0.2, %v2873_v47 }
 0x9b0   :  { %v2969_v29 = vmax.f32 %v4503_v45, %v2953_v46 }
 0x9b1   :  { %v2968_v8 = vmax.f32 %v2873_v47, %v2952_v48  ;;  %v4506_v50 = vpop.f32.mrb[58].mxu1 }
 0x9b2   :  { %v2955_v52 = vmul.f32 0.2, %v4506_v50  ;;  %v2883_v54 = vpop.f32.mrb[59].mxu1  ;;  %v2992_v55 = vmul.f32 %v5470_v49, %v2969_v29 }
 0x9b3   :  { %v2954_v56 = vmul.f32 0.2, %v2883_v54  ;;  %v2991_v57 = vmul.f32 %v5470_v49, %v2968_v8 }
 0x9b4   :  { %v2971_v32 = vmax.f32 %v4506_v50, %v2955_v52  ;;  %v3010_v58 = vsel %vm293_vm0, %v2992_v55, 0.0 }
 0x9b5   :  { %v2970_v59 = vmax.f32 %v2883_v54, %v2954_v56  ;;  %3011 = vadd.xlane.f32.xlu0 %v3010_v58  ;;  %v4509_v60 = vpop.f32.mrb[60].mxu1  ;;  %v3007_v15 = vsel %vm293_vm0, %v2991_v57, 0.0 }
 0x9b6   :  { %v2957_v0 = vmul.f32 0.2, %v4509_v60  ;;  %3008 = vadd.xlane.f32.xlu1 %v3007_v15  ;;  %v2893_v61 = vpop.f32.mrb[61].mxu1  ;;  %v2994_v62 = vmul.f32 %v5470_v49, %v2971_v32 }
 0x9b7   :  { %v2956_v63 = vmul.f32 0.2, %v2893_v61  ;;  %v2993_v1 = vmul.f32 %v5470_v49, %v2970_v59 }
 0x9b8   :  { %v2973_v2 = vmax.f32 %v4509_v60, %v2957_v0  ;;  %v3016_v3 = vsel %vm293_vm0, %v2994_v62, 0.0 }
 0x9b9   :  { %v2972_v4 = vmax.f32 %v2893_v61, %v2956_v63  ;;  %v4512_v5 = vpop.f32.mrb[62].mxu1  ;;  %v3013_v6 = vsel %vm293_vm0, %v2993_v1, 0.0 }
 0x9ba   :  { %v2959_v7 = vmul.f32 0.2, %v4512_v5  ;;  %3017 = vadd.xlane.f32.xlu1 %v3016_v3  ;;  %3014 = vadd.xlane.f32.xlu0 %v3013_v6  ;;  %v2903_v10 = vpop.f32.mrb[63].mxu1  ;;  %v2996_v11 = vmul.f32 %v5470_v49, %v2973_v2 }
 0x9bb   :  { %v2958_v12 = vmul.f32 0.2, %v2903_v10  ;;  %v2995_v13 = vmul.f32 %v5470_v49, %v2972_v4 }
 0x9bc   :  { %v2975_v14 = vmax.f32 %v4512_v5, %v2959_v7  ;;  %v3022_v19 = vsel %vm293_vm0, %v2996_v11, 0.0 }
 0x9bd   :  { %v2974_v21 = vmax.f32 %v2903_v10, %v2958_v12  ;;  %v4515_v22 = vpop.f32.mrb[64].mxu1  ;;  %v3019_v23 = vsel %vm293_vm0, %v2995_v13, 0.0 }
 0x9be   :  { %v2961_v24 = vmul.f32 0.2, %v4515_v22  ;;  %3023 = vadd.xlane.f32.xlu1 %v3022_v19  ;;  %3020 = vadd.xlane.f32.xlu0 %v3019_v23  ;;  %v2913_v25 = vpop.f32.mrb[65].mxu1  ;;  %v2998_v26 = vmul.f32 %v5470_v49, %v2975_v14 }
 0x9bf   :  { %v2960_v27 = vmul.f32 0.2, %v2913_v25  ;;  %v2997_v28 = vmul.f32 %v5470_v49, %v2974_v21 }
 0x9c0   :  { %v2977_v30 = vmax.f32 %v4515_v22, %v2961_v24  ;;  %v3028_v31 = vsel %vm293_vm0, %v2998_v26, 0.0 }
 0x9c1   :  { %v2976_v33 = vmax.f32 %v2913_v25, %v2960_v27  ;;  %v4518_v34 = vpop.f32.mrb[66].mxu1  ;;  %v3025_v16 = vsel %vm293_vm0, %v2997_v28, 0.0 }
 0x9c2   :  { %v2963_v20 = vmul.f32 0.2, %v4518_v34  ;;  %3029 = vadd.xlane.f32.xlu1 %v3028_v31  ;;  %3026 = vadd.xlane.f32.xlu0 %v3025_v16  ;;  %v2923_v35 = vpop.f32.mrb[67].mxu1  ;;  %v3000_v37 = vmul.f32 %v5470_v49, %v2977_v30 }
 0x9c3   :  { %v2962_v38 = vmul.f32 0.2, %v2923_v35  ;;  %v2999_v39 = vmul.f32 %v5470_v49, %v2976_v33 }
 0x9c4   :  { %v2979_v40 = vmax.f32 %v4518_v34, %v2963_v20  ;;  %v3034_v41 = vsel %vm293_vm0, %v3000_v37, 0.0 }
 0x9c5   :  { %v2978_v42 = vmax.f32 %v2923_v35, %v2962_v38  ;;  %v4521_v43 = vpop.f32.mrb[68].mxu1  ;;  %v3031_v18 = vsel %vm293_vm0, %v2999_v39, 0.0 }
 0x9c6   :  { %v2965_v44 = vmul.f32 0.2, %v4521_v43  ;;  %3035 = vadd.xlane.f32.xlu1 %v3034_v41  ;;  %3032 = vadd.xlane.f32.xlu0 %v3031_v18  ;;  %v2933_v45 = vpop.f32.mrb[69].mxu1  ;;  %v3002_v46 = vmul.f32 %v5470_v49, %v2979_v40 }
 0x9c7   :  { %v2964_v47 = vmul.f32 0.2, %v2933_v45  ;;  %v3001_v48 = vmul.f32 %v5470_v49, %v2978_v42 }
 0x9c8   :  { %v2981_v29 = vmax.f32 %v4521_v43, %v2965_v44  ;;  %v3040_v8 = vsel %vm293_vm0, %v3002_v46, 0.0 }
 0x9c9   :  { %v2980_v50 = vmax.f32 %v2933_v45, %v2964_v47  ;;  %v4524_v52 = vpop.f32.mrb[70].mxu1  ;;  %v3037_v54 = vsel %vm293_vm0, %v3001_v48, 0.0 }
 0x9ca   :  { %v2967_v55 = vmul.f32 0.2, %v4524_v52  ;;  %3041 = vadd.xlane.f32.xlu1 %v3040_v8  ;;  %3038 = vadd.xlane.f32.xlu0 %v3037_v54  ;;  %v2943_v56 = vpop.f32.mrb[71].mxu1  ;;  %v3004_v57 = vmul.f32 %v5470_v49, %v2981_v29 }
 0x9cb   :  { %v2966_v32 = vmul.f32 0.2, %v2943_v56  ;;  %v3003_v58 = vmul.f32 %v5470_v49, %v2980_v50 }
 0x9cc   :  { %v2983_v59 = vmax.f32 %v4524_v52, %v2967_v55  ;;  %v3046_v60 = vsel %vm293_vm0, %v3004_v57, 0.0 }
 0x9cd   :  { %v2982_v15 = vmax.f32 %v2943_v56, %v2966_v32  ;;  %v3043_v0 = vsel %vm293_vm0, %v3003_v58, 0.0 }
 0x9ce   :  { %3047 = vadd.xlane.f32.xlu1 %v3046_v60  ;;  %3044 = vadd.xlane.f32.xlu0 %v3043_v0  ;;  %v3006_v61 = vmul.f32 %v5470_v49, %v2983_v59 }
 0x9cf   :  { %v3005_v62 = vmul.f32 %v5470_v49, %v2982_v15 }
 0x9d0   :  { %v3052_v63 = vsel %vm293_vm0, %v3006_v61, 0.0 }
 0x9d1   :  { %v3049_v1 = vsel %vm293_vm0, %v3005_v62, 0.0  ;;  %vm4724_vm0 = vmpackc.low %vm3637_vm13, %vm4780_vm15 }
 0x9d2   :  { %3053 = vadd.xlane.f32.xlu1 %v3052_v63  ;;  %3050 = vadd.xlane.f32.xlu0 %v3049_v1 }
 0xa42   :  { %v3012_v2 = vpop.xlane.xlu0 %3011 }
 0xa43   :  { %v3967_v3 = vadd.f32 -1e+08, %v3012_v2  ;;  %v3009_v4 = vpop.xlane.xlu1 %3008  ;;  %v3190_v6 = vrot.slane %v3012_v2, %v5146_v53 }
 0xa44   :  { %v3966_v5 = vadd.f32 -1e+08, %v3009_v4  ;;  %v3186_v7 = vrot.slane %v3009_v4, %v5146_v53 }
 0xa45   :  { %v3094_v10 = vrot.slane %v3967_v3, %v5146_v53 }
 0xa46   :  { %v3090_v11 = vrot.slane %v3966_v5, %v5146_v53  ;;  %v3247_v21 = vsel %vm1378_vm2, %v3190_v6, %v3186_v7 }
 0xa47   :  { %v3018_v12 = vpop.xlane.xlu1 %3017  ;;  %v3015_v49 = vpop.xlane.xlu0 %3014 }
 0xa48   :  { %v3969_v13 = vadd.f32 -1e+08, %v3018_v12  ;;  %v3968_v14 = vadd.f32 -1e+08, %v3015_v49  ;;  %v3194_v19 = vrot.slane %v3015_v49, %v5146_v53  ;;  %v3198_v22 = vrot.slane %v3018_v12, %v5146_v53 }
 0xa49   :  { %v3151_v24 = vsel %vm1378_vm2, %v3094_v10, %v3090_v11 }
 0xa4a   :  { %v3098_v23 = vrot.slane %v3968_v14, %v5146_v53  ;;  %v3102_v25 = vrot.slane %v3969_v13, %v5146_v53  ;;  %v3248_v26 = vsel %vm1380_vm3, %v3194_v19, %v3247_v21 }
 0xa4b   :  { %v3024_v27 = vpop.xlane.xlu1 %3023  ;;  %v3021_v28 = vpop.xlane.xlu0 %3020  ;;  %v3249_v20 = vsel %vm1382_vm4, %v3198_v22, %v3248_v26 }
 0xa4c   :  { %v3152_v30 = vsel %vm1380_vm3, %v3098_v23, %v3151_v24  ;;  %v3971_v31 = vadd.f32 -1e+08, %v3024_v27  ;;  %v3970_v33 = vadd.f32 -1e+08, %v3021_v28  ;;  %v3202_v34 = vrot.slane %v3021_v28, %v5146_v53 }
 0xa4d   :  { %v3206_v16 = vrot.slane %v3024_v27, %v5146_v53  ;;  %v3153_v35 = vsel %vm1382_vm4, %v3102_v25, %v3152_v30 }
 0xa4e   :  { %v3106_v37 = vrot.slane %v3970_v33, %v5146_v53  ;;  %v3250_v38 = vsel %vm1384_vm5, %v3202_v34, %v3249_v20  ;;  %v3110_v41 = vrot.slane %v3971_v31, %v5146_v53 }
 0xa4f   :  { %v3030_v39 = vpop.xlane.xlu1 %3029  ;;  %v3027_v40 = vpop.xlane.xlu0 %3026  ;;  %v3251_v48 = vsel %vm1386_vm6, %v3206_v16, %v3250_v38 }
 0xa50   :  { %v3973_v42 = vadd.f32 -1e+08, %v3030_v39  ;;  %v3972_v43 = vadd.f32 -1e+08, %v3027_v40  ;;  %v3210_v18 = vrot.slane %v3027_v40, %v5146_v53  ;;  %v3154_v44 = vsel %vm1384_vm5, %v3106_v37, %v3153_v35 }
 0xa51   :  { %v3214_v46 = vrot.slane %v3030_v39, %v5146_v53  ;;  %v3155_v55 = vsel %vm1386_vm6, %v3110_v41, %v3154_v44 }
 0xa52   :  { %v3118_v45 = vrot.slane %v3973_v42, %v5146_v53  ;;  %v3114_v47 = vrot.slane %v3972_v43, %v5146_v53  ;;  %v3252_v50 = vsel %vm1388_vm7, %v3210_v18, %v3251_v48 }
 0xa53   :  { %v3036_v29 = vpop.xlane.xlu1 %3035  ;;  %v3033_v8 = vpop.xlane.xlu0 %3032  ;;  %v3253_v59 = vsel %vm1390_vm8, %v3214_v46, %v3252_v50 }
 0xa54   :  { %v3975_v52 = vadd.f32 -1e+08, %v3036_v29  ;;  %v3974_v54 = vadd.f32 -1e+08, %v3033_v8  ;;  %v3156_v56 = vsel %vm1388_vm7, %v3114_v47, %v3155_v55  ;;  %v3222_v57 = vrot.slane %v3036_v29, %v5146_v53 }
 0xa55   :  { %v3218_v32 = vrot.slane %v3033_v8, %v5146_v53  ;;  %v3157_v58 = vsel %vm1390_vm8, %v3118_v45, %v3156_v56  ;;  %v4707_v55 = vpack.c.bf16 %v3519_v51, %v3518_v9  ;;  %v3626_v56 = vld [vmem:[%s5676_s19] sm:$0xff] }
 0xa56   :  { %v3263_v0 = vsel %vm76_vm9, %v3157_v58, %v3253_v59  ;;  %v3126_v61 = vrot.slane %v3975_v52, %v5146_v53  ;;  %v3122_v62 = vrot.slane %v3974_v54, %v5146_v53  ;;  %v3520_v59 = vld [vmem:[%s5675_s16 + $0x10] sm:$0xff] }
 0xa57   :  { %v3042_v60 = vpop.xlane.xlu1 %3041  ;;  %v3039_v15 = vpop.xlane.xlu0 %3038  ;;  %v3265_v3 = vsel %vm1499_vm10, %v3263_v0, -inf  ;;  %v3254_v4 = vsel %vm1378_vm2, %v3222_v57, %v3218_v32  ;;  %4708 = vmatprep.subr.bf16.mxu1 %v4707_v55  ;;  %v3627_v57 = vld [vmem:[%s5676_s19 + $0x8] sm:$0xff] }
 0xa58   :  { %v3977_v63 = vadd.f32 -1e+08, %v3042_v60  ;;  %v3976_v1 = vadd.f32 -1e+08, %v3039_v15  ;;  %v3226_v2 = vrot.slane %v3039_v15, %v5146_v53  ;;  %v3230_v5 = vrot.slane %v3042_v60, %v5146_v53  ;;  %3266 = vmax.xlane.f32.xlu0 %v3265_v3  ;;  %v3521_v60 = vld [vmem:[%s5675_s16 + $0x18] sm:$0xff] }
 0xa59   :  { %v3158_v12 = vsel %vm1378_vm2, %v3126_v61, %v3122_v62  ;;  %v4719_v32 = vpack.c.bf16 %v3627_v57, %v3626_v56  ;;  %v4711_v61 = vpack.c.bf16 %v3521_v60, %v3520_v59  ;;  %v3522_v62 = vld [vmem:[%s5675_s16 + $0x20] sm:$0xff] }
 0xa5a   :  { %v3130_v6 = vrot.slane %v3976_v1, %v5146_v53  ;;  %v3255_v7 = vsel %vm1380_vm3, %v3226_v2, %v3254_v4  ;;  %v3134_v49 = vrot.slane %v3977_v63, %v5146_v53  ;;  %v3523_v63 = vld [vmem:[%s5675_s16 + $0x28] sm:$0xff] }
 0xa5b   :  { %v3048_v10 = vpop.xlane.xlu1 %3047  ;;  %v3045_v11 = vpop.xlane.xlu0 %3044  ;;  %v3256_v23 = vsel %vm1382_vm4, %v3230_v5, %v3255_v7  ;;  %4720 = vmatprep.subr.bf16.mxu0 %v4719_v32  ;;  %v4715_v2 = vpack.c.bf16 %v3523_v63, %v3522_v62  ;;  %v3628_v5 = vld [vmem:[%s5676_s19 + $0x10] sm:$0xff]  ;;  %v3618_v7 = vld [vmem:[%s5678_s18] sm:$0xff] }
 0xa5c   :  { %v3979_v13 = vadd.f32 -1e+08, %v3048_v10  ;;  %v3159_v14 = vsel %vm1380_vm3, %v3130_v6, %v3158_v12  ;;  %v3238_v19 = vrot.slane %v3048_v10, %v5146_v53  ;;  %v3978_v21 = vadd.f32 -1e+08, %v3045_v11  ;;  %v3619_v10 = vld [vmem:[%s5678_s18 + $0x8] sm:$0xff] }
 0xa5d   :  { %v3234_v22 = vrot.slane %v3045_v11, %v5146_v53  ;;  %v3160_v30 = vsel %vm1382_vm4, %v3134_v49, %v3159_v14  ;;  %v3620_v11 = vld [vmem:[%s5678_s18 + $0x10] sm:$0xff]  ;;  %v4729_v12 = vpack.c.bf16 %v3619_v10, %v3618_v7  ;;  %v3621_v49 = vld [vmem:[%s5678_s18 + $0x18] sm:$0xff] }
 0xa5e   :  { %v3142_v24 = vrot.slane %v3979_v13, %v5146_v53  ;;  %v3138_v25 = vrot.slane %v3978_v21, %v5146_v53  ;;  %v71_v13 = vld [vmem:[%s5677_s1 + $0x8] sm:$0xff]  ;;  %v4733_v14 = vpack.c.bf16 %v3621_v49, %v3620_v11 }
 0xa5f   :  { %v3257_v26 = vsel %vm1384_vm5, %v3234_v22, %v3256_v23  ;;  %v3054_v27 = vpop.xlane.xlu1 %3053  ;;  %v3051_v28 = vpop.xlane.xlu0 %3050  ;;  %v3623_v21 = vld [vmem:[%s5678_s18 + $0x28] sm:$0xff]  ;;  %v3624_v23 = vld [vmem:[%s5678_s18 + $0x30] sm:$0xff] }
 0xa60   :  { %v3981_v31 = vadd.f32 -1e+08, %v3054_v27  ;;  %v3980_v33 = vadd.f32 -1e+08, %v3051_v28  ;;  %v3242_v34 = vrot.slane %v3051_v28, %v5146_v53  ;;  %v3161_v16 = vsel %vm1384_vm5, %v3138_v25, %v3160_v30 }
 0xa61   :  { %v3246_v20 = vrot.slane %v3054_v27, %v5146_v53  ;;  %v3258_v35 = vsel %vm1386_vm6, %v3238_v19, %v3257_v26  ;;  %v3162_v40 = vsel %vm1386_vm6, %v3142_v24, %v3161_v16  ;;  %v3622_v19 = vld [vmem:[%s5678_s18 + $0x20] sm:$0xff]  ;;  %v3625_v24 = vld [vmem:[%s5678_s18 + $0x38] sm:$0xff] }
 0xa62   :  { %v3150_v37 = vrot.slane %v3981_v31, %v5146_v53  ;;  %v3146_v38 = vrot.slane %v3980_v33, %v5146_v53  ;;  %v3259_v39 = vsel %vm1388_vm7, %v3242_v34, %v3258_v35  ;;  %v4737_v22 = vpack.c.bf16 %v3623_v21, %v3622_v19  ;;  %v3988_v31 = vld [vmem:[%s5679_s17] ss:$0 sm:$0xff] }
 0xa63   :  { %v3260_v43 = vsel %vm1390_vm8, %v3246_v20, %v3259_v39  ;;  %v4741_v25 = vpack.c.bf16 %v3625_v24, %v3624_v23 }
 0xa64   :  { %v3163_v41 = vsel %vm1388_vm7, %v3146_v38, %v3162_v40 }
 0xa65   :  { %v3164_v42 = vsel %vm1390_vm8, %v3150_v37, %v3163_v41 }
 0xa66   :  { %v3264_v18 = vsel %vm76_vm9, %v3164_v42, %v3260_v43  ;;  %v3994_v42 = vld [vmem:[%s5680_s20] ss:$0 sm:$0xff] }
 0xa67   :  { %v3268_v44 = vsel %vm1499_vm10, %v3264_v18, -inf }
 0xa68   :  { %3269 = vmax.xlane.f32.xlu1 %v3268_v44 }
 0xae5   :  { %v3267_v45 = vpop.xlane.xlu0 %3266 }
 0xae6   :  { %v3271_v46 = vsub.f32 %v3263_v0, %v3267_v45 }
 0xae8   :  { %v3273_v53 = vmul.f32 1.442695, %v3271_v46 }
 0xaea   :  { %4766 = vpow2.f32 %v3273_v53 }
 0xaf4   :  { %v4767_v48 = vpop.eup %4766 }
 0xaf5   :  { %v3270_v47 = vpop.xlane.xlu1 %3269  ;;  %v3277_v8 = vsel %vm1499_vm10, %v4767_v48, 0.0 }
 0xaf6   :  { %v3272_v29 = vsub.f32 %v3264_v18, %v3270_v47  ;;  %3278 = vadd.xlane.f32.xlu0 %v3277_v8 }
 0xaf8   :  { %v3275_v50 = vmul.f32 1.442695, %v3272_v29 }
 0xafa   :  { %4768 = vpow2.f32 %v3275_v50 }
 0xb04   :  { %v4769_v52 = vpop.eup %4768 }
 0xb05   :  { %v3280_v54 = vsel %vm1499_vm10, %v4769_v52, 0.0 }
 0xb06   :  { %3281 = vadd.xlane.f32.xlu1 %v3280_v54 }
 0xb0c   :  { %3610 = vrot.lane.b32.xlu0 %v5278_v17, %s4779_s5 }
 0xb17   :  { %3612 = vrot.lane.b32.xlu1 %v5290_v36, %s4779_s5 }
 0xb83   :  { %v3279_v58 = vpop.xlane.xlu0 %3278 }
 0xb84   :  { %4770 = vrcp.f32 %v3279_v58 }
 0xb87   :  { %v3611_v37 = vpop.permute.xlu0 %3610 }
 0xb8e   :  { %v4771_v15 = vpop.eup %4770 }
 0xb8f   :  { %v3285_v0 = vmul.f32 %v4771_v15, %v4767_v48 }
 0xb91   :  { %4543 = vmatmul.mubr.msk.f32.vlgmr.msra.gmra.mrb[72].mxu1 %vm1499_vm10, %v3285_v0 }
 0xb92   :  { %4710 = vmatpush3.bf16.msra.mxu1 %v4707_v55  ;;  %4562 = vmatprep.mubr.msk.f32.mxu1 %vm754_vm1, %v5278_v17  ;;  %v3629_v17 = vld [vmem:[%s5676_s19 + $0x18] sm:$0x3f] }
 0xb93   :  { %v3282_v1 = vpop.xlane.xlu1 %3281  ;;  %4712 = vmatprep.subr.bf16.mxu1 %v4711_v61  ;;  %v4723_v6 = vpack.c.bf16 %v3629_v17, %v3628_v5 }
 0xb94   :  { %4772 = vrcp.f32 %v3282_v1 }
 0xb96   :  { %4714 = vmatpush3.bf16.msra.mxu1 %v4711_v61 }
 0xb97   :  { %4716 = vmatprep.subr.bf16.mxu1 %v4715_v2  ;;  %v3613_v39 = vpop.permute.xlu1 %3612 }
 0xb9a   :  { %4718 = vmatpush3.bf16.msra.mxu1 %v4715_v2 }
 0xb9d   :  { %4563 = vmatmul.mubr.msk.f32.vlgmr.msra.gmra.mrb[74].mxu1 %vm754_vm1, %v5290_v36  ;;  %v70_v36 = vld [vmem:[%s5677_s1] sm:$0xff]  ;;  %vm3716_vm1 = vcmask 523264  }
 0xb9e   :  { %v4773_v3 = vpop.eup %4772 }
 0xb9f   :  { %v3286_v4 = vmul.f32 %v4773_v3, %v4769_v52 }
 0xba1   :  { %4548 = vmatmul.mubr.msk.f32.vlgmr.msra.gmra.mrb[66].mxu0 %vm1499_vm10, %v3286_v4 }
 0xba2   :  { %4722 = vmatpush3.bf16.msra.mxu0 %v4719_v32  ;;  %4573 = vmatprep.mubr.msk.f32.mxu0 %vm3630_vm14, %v70_v36 }
 0xba3   :  { %4725 = vmatprep.subr.msk.bf16.mxu0 %vm4724_vm0, %v4723_v6 }
 0xba6   :  { %4728 = vmatpush3.bf16.msk.msra.mxu0 %vm4724_vm0, %v4723_v6 }
 0xba7   :  { %4730 = vmatprep.subr.bf16.mxu0 %v4729_v12 }
 0xba9   :  { %4574 = vmatmul.mubr.msk.f32.vlgmr.msra.gmra.mrb[68].mxu0 %vm3630_vm14, %v71_v13 }
 0xbaa   :  { %4732 = vmatpush3.bf16.msra.mxu0 %v4729_v12 }
 0xbab   :  { %4734 = vmatprep.subr.bf16.mxu0 %v4733_v14 }
 0xbae   :  { %4736 = vmatpush3.bf16.msra.mxu0 %v4733_v14 }
 0xbaf   :  { %4738 = vmatprep.subr.bf16.mxu0 %v4737_v22 }
 0xbb2   :  { %4740 = vmatpush3.bf16.msra.mxu0 %v4737_v22 }
 0xbb3   :  { %4742 = vmatprep.subr.bf16.mxu0 %v4741_v25 }
 0xbb6   :  { %4744 = vmatpush3.bf16.msra.mxu0 %v4741_v25 }
 0xc64   :  { %v3441_v26 = vpop.f32.mrb[72].mxu1 }
 0xc65   :  { %v4544_v27 = vpop.f32.mrb[73].mxu1 }
 0xc70   :  { %v4564_v28 = vpop.f32.mrb[74].mxu1 }
 0xc71   :  { %v3590_v30 = vpop.f32.mrb[75].mxu1 }
 0xc72   :  { %v3599_v33 = vadd.f32 %v3590_v30, %v3441_v26 }
 0xc74   :  { %v3514_v34 = vpop.f32.mrb[66].mxu0  ;;  %v3608_v35 = vadd.f32 %v3988_v31, %v3599_v33 }
 0xc75   :  { %v3600_v16 = vadd.f32 %v4564_v28, %v3514_v34  ;;  %v4549_v20 = vpop.f32.mrb[67].mxu0 }
 0xc76   :  { %v3616_v40 = vsel %vm1847_vm12, %v3608_v35, %v3611_v37 }
 0xc77   :  { %v3609_v38 = vadd.f32 %v3988_v31, %v3600_v16  ;;  %4592 = vmatprep.mubr.msk.f32.mxu0 %vm3716_vm1, %v3616_v40 }
 0xc79   :  { %v3617_v41 = vsel %vm1847_vm12, %v3609_v38, %v3613_v39 }
 0xc7a   :  { %4593 = vmatmul.mubr.msk.f32.vlgmr.msra.gmra.mrb[68].mxu0 %vm3716_vm1, %v3617_v41 }
 0xd4d   :  { %v4594_v43 = vpop.f32.mrb[68].mxu0 }
 0xd4e   :  { %v3806_v18 = vadd.f32 %v4594_v43, %v3994_v42  ;;  %v3789_v44 = vpop.f32.mrb[69].mxu0 }
 0xd4f   :  { %v3805_v45 = vadd.f32 %v3994_v42, %v3789_v44 }
 0xd50   :  { %3808 = vst [vmem:[%s5681_s21 + $0x8] sm:$0xff] %v3806_v18 }
 0xd51   :  { %3807 = vst [vmem:[%s5681_s21] sm:$0xff] %v3805_v45 }

</bundles_post_ra>
